<compile_context>
chip_gen: v6e
topology: v6e:2x2x1
jax: 0.10.0
libtpu: 0.0.40
codegen_flags: <defaults>
</compile_context>

<pallas_src>
import jax
import jax.numpy as jnp
from jax import lax
from jax.experimental import pallas as pl
from jax.experimental.pallas import tpu as pltpu

B = 2          # batch size
S = 8          # sequence length
H = 32         # hidden size (bert.config.hidden_size stand-in)
NH = 2         # attention heads
DH = H // NH   # head dim
FF = 64        # FFN intermediate size
V = 64         # vocabulary size
K = 16         # MAX_KB_ARR_LENGTH (== label_size of CE logits)
OUT_W = 128    # lane-dense output slab width
FVEC_W = 128   # lane-padded f32 parameter slab width

# int32 column-slab row offsets (everything already in (rows, 1) layout)
IC_IDS = 0                 # B*S rows: input_ids flattened (b-major)
IC_KB = B * S              # B*K rows: kb_arr flattened
IC_LAB = B * S + B * K     # B rows: labels
N_IC = IC_LAB + B          # 50

# f32 slab row offsets (width FVEC_W, payload in the leading columns)
R_POS = 0                  # S rows: pos_emb
R_BQKV = S                 # bq|bk|bv packed (3H wide)
R_BO = S + 1
R_B1 = S + 2               # FF wide
R_B2 = S + 3
R_BIN = S + 4
R_EMBG, R_EMBB = S + 5, S + 6
R_LN1G, R_LN1B = S + 7, S + 8
R_LN2G, R_LN2B = S + 9, S + 10
R_DEC = S + 11
R_MASK = S + 12            # B rows: input_mask (S wide)
N_FVEC = R_MASK + B        # 22

# bf16 weight-slab row offsets (canonical (in, out) layout, width H)
W_WO = 0
W_W2 = H
W_WIN = H + FF
N_WREST = W_WIN + H        # 128


def _ln(x, g, b, eps=1e-12):
    mu = jnp.mean(x, axis=-1, keepdims=True)
    var = jnp.mean((x - mu) ** 2, axis=-1, keepdims=True)
    return (x - mu) * lax.rsqrt(var + eps) * g + b


# --------------------------------------------------------------------------
# Fused kernel: in-kernel embedding lookup + emb-LN + encoder layer +
#               HAN attention pooler + kb scoring + CE per-example NLL
# --------------------------------------------------------------------------
def fused_kernel(idc_ref, wemb_ref, wqkv_ref, wrest_ref, w1_ref, fvec_ref, out_ref):
    f32 = jnp.float32
    bf16 = jnp.bfloat16

    fv = fvec_ref[...]                                     # (N_FVEC, 128) f32

    def vrow(r, w=H):                                      # (1, w) f32 param row
        return fv[r:r + 1, 0:w]

    # ---- in-kernel embedding lookups (one-hot f32 matmuls; no XLA gather) ----
    wemb = wemb_ref[...]                                   # (V, H) f32
    ids_col = idc_ref[IC_IDS:IC_IDS + B * S, :]            # (B*S, 1) i32
    oh_x = (lax.broadcasted_iota(jnp.int32, (B * S, V), 1) == ids_col).astype(f32)
    x_emb = jnp.dot(oh_x, wemb, preferred_element_type=f32)           # (B*S, H)
    pos = fv[R_POS:R_POS + S, 0:H].reshape(1, S, H)
    x_emb = (x_emb.reshape(B, S, H) + pos).reshape(B * S, H)

    kb_col = idc_ref[IC_KB:IC_KB + B * K, :]               # (B*K, 1) i32
    oh_kb = (lax.broadcasted_iota(jnp.int32, (B * K, V), 1) == kb_col).astype(f32)
    kb_emb = jnp.dot(oh_kb, wemb, preferred_element_type=f32).reshape(B, K, H)

    labels = idc_ref[IC_LAB:IC_LAB + B, :]                 # (B, 1) i32
    maskf = fv[R_MASK:R_MASK + B, 0:S]                     # (B, S) f32
    neg_mask = ((maskf - 1.0) * 1e9).reshape(B, 1, S)      # additive key mask

    # ---- embedding LayerNorm ----
    x = _ln(x_emb, vrow(R_EMBG), vrow(R_EMBB))             # (B*S, H) f32
    x_b = x.astype(bf16)

    # ---- self-attention: 1 packed QKV matmul, per-head SxS einsums, 1 Wo matmul ----
    qkv = jnp.dot(x_b, wqkv_ref[...], preferred_element_type=f32) + vrow(R_BQKV, 3 * H)
    scale = 1.0 / (DH ** 0.5)
    ctx_heads = []
    for h in range(NH):                                    # static, NH = 2
        lo = h * DH
        qh = qkv[:, lo:lo + DH].reshape(B, S, DH).astype(bf16)
        kh = qkv[:, H + lo:H + lo + DH].reshape(B, S, DH).astype(bf16)
        vh = qkv[:, 2 * H + lo:2 * H + lo + DH].reshape(B, S, DH).astype(bf16)
        s = jnp.einsum('bqd,bkd->bqk', qh, kh,
                       preferred_element_type=f32) * scale + neg_mask
        p = jax.nn.softmax(s, axis=-1)                     # f32 softmax
        ctx_h = jnp.einsum('bqk,bkd->bqd', p.astype(bf16), vh,
                           preferred_element_type=f32)     # (B, S, DH)
        ctx_heads.append(ctx_h.reshape(B * S, DH))
    ctx = jnp.concatenate(ctx_heads, axis=-1)              # (B*S, H) f32
    attn = jnp.dot(ctx.astype(bf16), wrest_ref[W_WO:W_WO + H, :],
                   preferred_element_type=f32) + vrow(R_BO)
    h1 = _ln(x + attn, vrow(R_LN1G), vrow(R_LN1B))

    # ---- feed-forward ----
    ff = jnp.dot(h1.astype(bf16), w1_ref[...],
                 preferred_element_type=f32) + vrow(R_B1, FF)          # (B*S, FF)
    ff = jax.nn.gelu(ff, approximate=True)
    ff = jnp.dot(ff.astype(bf16), wrest_ref[W_W2:W_W2 + FF, :],
                 preferred_element_type=f32) + vrow(R_B2)
    h2 = _ln(h1 + ff, vrow(R_LN2G), vrow(R_LN2B))          # last_hidden_states

    # ---- HAN attention pooler ----
    enc = jnp.tanh(jnp.dot(h2.astype(bf16), wrest_ref[W_WIN:W_WIN + H, :],
                           preferred_element_type=f32) + vrow(R_BIN))  # (B*S, H)
    enc3 = enc.reshape(B, S, H)
    dec3 = vrow(R_DEC).reshape(1, 1, H)
    scores = jnp.sum(enc3 * dec3, axis=-1)                 # (B, S) f32 VPU + lane reduce
    scores = jnp.where(maskf > 0.0, scores, -1e30)
    aw = jax.nn.softmax(scores, axis=-1)                   # (B, S) attention weights
    pooled = jnp.einsum('bqs,bsd->bqd', aw.reshape(B, 1, S), enc3,
                        preferred_element_type=f32)        # (B, 1, H) f32

    # ---- kb scoring: f32 VPU broadcast-multiply + lane reduce ----
    prob = jnp.sum(kb_emb * pooled, axis=-1)               # (B, K) f32 logits
    # (softmax(prob_logit) is computed but unused in the torch return tuple.)

    # ---- CrossEntropy per-example NLL (mean taken in the JAX wrapper) ----
    m = jnp.max(prob, axis=-1, keepdims=True)
    lse = m + jnp.log(jnp.sum(jnp.exp(prob - m), axis=-1, keepdims=True))
    col_k = lax.broadcasted_iota(jnp.int32, (B, K), 1)
    picked = jnp.sum(jnp.where(col_k == labels, prob, 0.0), axis=-1, keepdims=True)
    nll = lse - picked                                     # (B, 1)

    # ---- single lane-dense (B, 128) output store ----
    out_ref[...] = jnp.concatenate(
        [prob, aw, nll, jnp.zeros((B, OUT_W - K - S - 1), f32)], axis=-1)


# --------------------------------------------------------------------------
# Parameter / input packing + end-to-end forward
# --------------------------------------------------------------------------
def pack_params(p):
    # canonical (in, out) layouts for MXU RHS operands
    wqkv = jnp.concatenate([p['wq'], p['wk'], p['wv']], axis=1).astype(jnp.bfloat16)
    wrest = jnp.concatenate([p['wo'], p['w2'], p['w_in']], axis=0).astype(jnp.bfloat16)
    w1 = p['w1'].astype(jnp.bfloat16)
    wemb = p['word_emb'].astype(jnp.float32)

    def row(v):
        v = jnp.asarray(v, jnp.float32).reshape(1, -1)
        return jnp.pad(v, ((0, 0), (0, FVEC_W - v.shape[1])))

    fvec_static = jnp.concatenate([
        jnp.pad(p['pos_emb'].astype(jnp.float32), ((0, 0), (0, FVEC_W - H))),
        row(jnp.concatenate([p['bq'], p['bk'], p['bv']])),
        row(p['bo']), row(p['b1']), row(p['b2']), row(p['b_in']),
        row(p['emb_ln_g']), row(p['emb_ln_b']),
        row(p['ln1_g']), row(p['ln1_b']),
        row(p['ln2_g']), row(p['ln2_b']),
        row(p['dec_h']),
    ], axis=0)                                             # (R_MASK, 128) f32
    return wemb, wqkv, wrest, w1, fvec_static


def bert_pretrained_classifier_forward(params, input_ids, input_mask, labels, kb_arr):
    wemb, wqkv, wrest, w1, fvec_static = pack_params(params)

    mask_rows = jnp.pad(input_mask.astype(jnp.float32), ((0, 0), (0, FVEC_W - S)))
    fvec = jnp.concatenate([fvec_static, mask_rows], axis=0)          # (N_FVEC, 128)

    idcol = jnp.concatenate([
        input_ids.reshape(B * S, 1),
        kb_arr.reshape(B * K, 1),
        labels.reshape(B, 1),
    ], axis=0).astype(jnp.int32)                                       # (N_IC, 1)

    vmem = pl.BlockSpec(memory_space=pltpu.MemorySpace.VMEM)
    out = pl.pallas_call(
        fused_kernel,
        out_shape=jax.ShapeDtypeStruct((B, OUT_W), jnp.float32),
        in_specs=[vmem] * 6,
        out_specs=vmem,
    )(idcol, wemb, wqkv, wrest, w1, fvec)

    prob_logit = out[:, :K]                                # (B, K)
    attention_weights = out[:, K:K + S]                    # (B, S)
    loss = jnp.mean(out[:, K + S])                         # mean CE loss
    return loss, prob_logit, attention_weights


def init_params(key):
    ks = jax.random.split(key, 10)

    def n(k, shape, scale=0.02):
        return jax.random.normal(k, shape, jnp.float32) * scale

    return {
        'word_emb': n(ks[0], (V, H)),
        'pos_emb':  n(ks[1], (S, H)),
        'emb_ln_g': jnp.ones((H,), jnp.float32),
        'emb_ln_b': jnp.zeros((H,), jnp.float32),
        'wq': n(ks[2], (H, H)), 'bq': jnp.zeros((H,), jnp.float32),
        'wk': n(ks[3], (H, H)), 'bk': jnp.zeros((H,), jnp.float32),
        'wv': n(ks[4], (H, H)), 'bv': jnp.zeros((H,), jnp.float32),
        'wo': n(ks[5], (H, H)), 'bo': jnp.zeros((H,), jnp.float32),
        'ln1_g': jnp.ones((H,), jnp.float32), 'ln1_b': jnp.zeros((H,), jnp.float32),
        'w1': n(ks[6], (H, FF)), 'b1': jnp.zeros((FF,), jnp.float32),
        'w2': n(ks[7], (FF, H)), 'b2': jnp.zeros((H,), jnp.float32),
        'ln2_g': jnp.ones((H,), jnp.float32), 'ln2_b': jnp.zeros((H,), jnp.float32),
        # HAN_Attention_Pooler_Layer
        'w_in': n(ks[8], (H, H)), 'b_in': jnp.zeros((H,), jnp.float32),
        'dec_h': n(ks[9], (H,), scale=1.0),   # torch.randn(h_dim)
    }


if __name__ == "__main__":
    key = jax.random.PRNGKey(0)
    pkey, ikey, kkey, lkey = jax.random.split(key, 4)

    params = init_params(pkey)
    input_ids = jax.random.randint(ikey, (B, S), 0, V, dtype=jnp.int32)
    lengths = jnp.array([S, 5], dtype=jnp.int32)
    input_mask = (jnp.arange(S)[None, :] < lengths[:, None]).astype(jnp.int32)
    kb_arr = jax.random.randint(kkey, (B, K), 0, V, dtype=jnp.int32)
    labels = jax.random.randint(lkey, (B,), 0, K, dtype=jnp.int32)

    fwd = jax.jit(bert_pretrained_classifier_forward)
    loss, prob_logit, attention_weights = fwd(
        params, input_ids, input_mask, labels, kb_arr)
    jax.block_until_ready((loss, prob_logit, attention_weights))
    print("KERNEL_OK")
</pallas_src>

<mosaic_0001>
module attributes {stable_mosaic.version = 11 : i64} {
  func.func @fused_kernel(%arg0: memref<50x1xi32, #tpu.memory_space<vmem>>, %arg1: memref<64x32xf32, #tpu.memory_space<vmem>>, %arg2: memref<32x96xbf16, #tpu.memory_space<vmem>>, %arg3: memref<128x32xbf16, #tpu.memory_space<vmem>>, %arg4: memref<32x64xbf16, #tpu.memory_space<vmem>>, %arg5: memref<22x128xf32, #tpu.memory_space<vmem>>, %arg6: memref<2x128xf32, #tpu.memory_space<vmem>>) attributes {dimension_semantics = [], scalar_prefetch = 0 : i64, scratch_operands = 0 : i64, tpu.core_type = #tpu.core_type<tc>} {
    %c0 = arith.constant 0 : index
    %c0_0 = arith.constant 0 : index
    %0 = vector.load %arg5[%c0, %c0_0] : memref<22x128xf32, #tpu.memory_space<vmem>>, vector<22x128xf32>
    %c0_1 = arith.constant 0 : index
    %c0_2 = arith.constant 0 : index
    %1 = vector.load %arg1[%c0_1, %c0_2] : memref<64x32xf32, #tpu.memory_space<vmem>>, vector<64x32xf32>
    %c0_3 = arith.constant 0 : index
    %c0_4 = arith.constant 0 : index
    %2 = vector.load %arg0[%c0_3, %c0_4] : memref<50x1xi32, #tpu.memory_space<vmem>>, vector<16x1xi32>
    %3 = tpu.iota {dimensions = array<i32: 1>} : vector<16x64xi32>
    %4 = vector.broadcast %2 : vector<16x1xi32> to vector<16x64xi32>
    %5 = arith.cmpi eq, %3, %4 : vector<16x64xi32>
    %6 = arith.extui %5 : vector<16x64xi1> to vector<16x64xi32>
    %7 = arith.sitofp %6 : vector<16x64xi32> to vector<16x64xf32>
    %cst = arith.constant dense<0.000000e+00> : vector<16x32xf32>
    %8 = tpu.matmul %7, %1, %cst {dimension_numbers = #tpu.dot_dimension_numbers<[1], [0], [0], [1], [0, 0, 1, 1], [], []>} : vector<16x64xf32>, vector<64x32xf32>, vector<16x32xf32> -> vector<16x32xf32>
    %9 = vector.extract_strided_slice %0 {offsets = [0, 0], sizes = [8, 32], strides = [1, 1]} : vector<22x128xf32> to vector<8x32xf32>
    %10 = vector.shape_cast %9 : vector<8x32xf32> to vector<1x8x32xf32>
    %11 = vector.shape_cast %8 : vector<16x32xf32> to vector<2x8x32xf32>
    %12 = vector.broadcast %10 : vector<1x8x32xf32> to vector<2x8x32xf32>
    %13 = arith.addf %11, %12 : vector<2x8x32xf32>
    %14 = vector.shape_cast %13 : vector<2x8x32xf32> to vector<16x32xf32>
    %c16 = arith.constant 16 : index
    %c0_5 = arith.constant 0 : index
    %15 = vector.load %arg0[%c16, %c0_5] : memref<50x1xi32, #tpu.memory_space<vmem>>, vector<32x1xi32>
    %16 = tpu.iota {dimensions = array<i32: 1>} : vector<32x64xi32>
    %17 = vector.broadcast %15 : vector<32x1xi32> to vector<32x64xi32>
    %18 = arith.cmpi eq, %16, %17 : vector<32x64xi32>
    %19 = arith.extui %18 : vector<32x64xi1> to vector<32x64xi32>
    %20 = arith.sitofp %19 : vector<32x64xi32> to vector<32x64xf32>
    %cst_6 = arith.constant dense<0.000000e+00> : vector<32x32xf32>
    %21 = tpu.matmul %20, %1, %cst_6 {dimension_numbers = #tpu.dot_dimension_numbers<[1], [0], [0], [1], [0, 0, 1, 1], [], []>} : vector<32x64xf32>, vector<64x32xf32>, vector<32x32xf32> -> vector<32x32xf32>
    %22 = vector.shape_cast %21 : vector<32x32xf32> to vector<2x16x32xf32>
    %c48 = arith.constant 48 : index
    %c0_7 = arith.constant 0 : index
    %23 = vector.load %arg0[%c48, %c0_7] : memref<50x1xi32, #tpu.memory_space<vmem>>, vector<2x1xi32>
    %24 = vector.extract_strided_slice %0 {offsets = [20, 0], sizes = [2, 8], strides = [1, 1]} : vector<22x128xf32> to vector<2x8xf32>
    %cst_8 = arith.constant 1.000000e+00 : f32
    %25 = vector.broadcast %cst_8 : f32 to vector<2x8xf32>
    %26 = arith.subf %24, %25 : vector<2x8xf32>
    %cst_9 = arith.constant 1.000000e+09 : f32
    %27 = vector.broadcast %cst_9 : f32 to vector<2x8xf32>
    %28 = arith.mulf %26, %27 : vector<2x8xf32>
    %29 = vector.shape_cast %28 : vector<2x8xf32> to vector<2x1x8xf32>
    %30 = vector.extract_strided_slice %0 {offsets = [13, 0], sizes = [1, 32], strides = [1, 1]} : vector<22x128xf32> to vector<1x32xf32>
    %31 = vector.extract_strided_slice %0 {offsets = [14, 0], sizes = [1, 32], strides = [1, 1]} : vector<22x128xf32> to vector<1x32xf32>
    %cst_10 = arith.constant dense<0.000000e+00> : vector<16xf32>
    %32 = vector.multi_reduction <add>, %14, %cst_10 [1] : vector<16x32xf32> to vector<16xf32>
    %33 = vector.shape_cast %32 : vector<16xf32> to vector<16x1xf32>
    %cst_11 = arith.constant 3.200000e+01 : f32
    %34 = vector.broadcast %cst_11 : f32 to vector<16x1xf32>
    %35 = arith.divf %33, %34 : vector<16x1xf32>
    %36 = vector.broadcast %35 : vector<16x1xf32> to vector<16x32xf32>
    %37 = arith.subf %14, %36 : vector<16x32xf32>
    %38 = arith.mulf %37, %37 : vector<16x32xf32>
    %cst_12 = arith.constant dense<0.000000e+00> : vector<16xf32>
    %39 = vector.multi_reduction <add>, %38, %cst_12 [1] : vector<16x32xf32> to vector<16xf32>
    %40 = vector.shape_cast %39 : vector<16xf32> to vector<16x1xf32>
    %cst_13 = arith.constant 3.200000e+01 : f32
    %41 = vector.broadcast %cst_13 : f32 to vector<16x1xf32>
    %42 = arith.divf %40, %41 : vector<16x1xf32>
    %43 = vector.broadcast %35 : vector<16x1xf32> to vector<16x32xf32>
    %44 = arith.subf %14, %43 : vector<16x32xf32>
    %cst_14 = arith.constant 9.99999996E-13 : f32
    %45 = vector.broadcast %cst_14 : f32 to vector<16x1xf32>
    %46 = arith.addf %42, %45 : vector<16x1xf32>
    %47 = math.rsqrt %46 : vector<16x1xf32>
    %48 = vector.broadcast %47 : vector<16x1xf32> to vector<16x32xf32>
    %49 = arith.mulf %44, %48 : vector<16x32xf32>
    %50 = vector.broadcast %30 : vector<1x32xf32> to vector<16x32xf32>
    %51 = arith.mulf %49, %50 : vector<16x32xf32>
    %52 = vector.broadcast %31 : vector<1x32xf32> to vector<16x32xf32>
    %53 = arith.addf %51, %52 : vector<16x32xf32>
    %54 = arith.truncf %53 : vector<16x32xf32> to vector<16x32xbf16>
    %c0_15 = arith.constant 0 : index
    %c0_16 = arith.constant 0 : index
    %55 = vector.load %arg2[%c0_15, %c0_16] : memref<32x96xbf16, #tpu.memory_space<vmem>>, vector<32x96xbf16>
    %cst_17 = arith.constant dense<0.000000e+00> : vector<16x96xf32>
    %56 = tpu.matmul %54, %55, %cst_17 {dimension_numbers = #tpu.dot_dimension_numbers<[1], [0], [0], [1], [0, 0, 1, 1], [], []>} : vector<16x32xbf16>, vector<32x96xbf16>, vector<16x96xf32> -> vector<16x96xf32>
    %57 = vector.extract_strided_slice %0 {offsets = [8, 0], sizes = [1, 96], strides = [1, 1]} : vector<22x128xf32> to vector<1x96xf32>
    %58 = vector.broadcast %57 : vector<1x96xf32> to vector<16x96xf32>
    %59 = arith.addf %56, %58 : vector<16x96xf32>
    %60 = vector.extract_strided_slice %59 {offsets = [0, 0], sizes = [16, 16], strides = [1, 1]} : vector<16x96xf32> to vector<16x16xf32>
    %61 = vector.shape_cast %60 : vector<16x16xf32> to vector<2x8x16xf32>
    %62 = arith.truncf %61 : vector<2x8x16xf32> to vector<2x8x16xbf16>
    %63 = vector.extract_strided_slice %59 {offsets = [0, 32], sizes = [16, 16], strides = [1, 1]} : vector<16x96xf32> to vector<16x16xf32>
    %64 = vector.shape_cast %63 : vector<16x16xf32> to vector<2x8x16xf32>
    %65 = arith.truncf %64 : vector<2x8x16xf32> to vector<2x8x16xbf16>
    %66 = vector.extract_strided_slice %59 {offsets = [0, 64], sizes = [16, 16], strides = [1, 1]} : vector<16x96xf32> to vector<16x16xf32>
    %67 = vector.shape_cast %66 : vector<16x16xf32> to vector<2x8x16xf32>
    %68 = arith.truncf %67 : vector<2x8x16xf32> to vector<2x8x16xbf16>
    "tpu.trace_start"() <{level = 10 : i32, message = "bqd,bkd->bqk"}> : () -> ()
    %cst_18 = arith.constant dense<0.000000e+00> : vector<2x8x8xf32>
    %69 = tpu.matmul %62, %65, %cst_18 {dimension_numbers = #tpu.dot_dimension_numbers<[2], [2], [1], [1], [0, 0, 0, 1, 1, 1], [0], [0]>} : vector<2x8x16xbf16>, vector<2x8x16xbf16>, vector<2x8x8xf32> -> vector<2x8x8xf32>
    "tpu.trace_stop"() : () -> ()
    %cst_19 = arith.constant 2.500000e-01 : f32
    %70 = vector.broadcast %cst_19 : f32 to vector<2x8x8xf32>
    %71 = arith.mulf %69, %70 : vector<2x8x8xf32>
    %72 = vector.broadcast %29 : vector<2x1x8xf32> to vector<2x8x8xf32>
    %73 = arith.addf %71, %72 : vector<2x8x8xf32>
    %cst_20 = arith.constant dense<0xFF800000> : vector<2x8xf32>
    %74 = vector.multi_reduction <maximumf>, %73, %cst_20 [2] : vector<2x8x8xf32> to vector<2x8xf32>
    %cst_21 = arith.constant 0xFF800000 : f32
    %75 = vector.broadcast %cst_21 : f32 to vector<2x8xf32>
    %76 = arith.maximumf %75, %74 : vector<2x8xf32>
    %77 = vector.shape_cast %76 : vector<2x8xf32> to vector<2x8x1xf32>
    %78 = vector.broadcast %77 : vector<2x8x1xf32> to vector<2x8x8xf32>
    %79 = arith.subf %73, %78 : vector<2x8x8xf32>
    %80 = math.exp %79 : vector<2x8x8xf32>
    %cst_22 = arith.constant dense<0.000000e+00> : vector<2x8xf32>
    %81 = vector.multi_reduction <add>, %80, %cst_22 [2] : vector<2x8x8xf32> to vector<2x8xf32>
    %82 = vector.shape_cast %81 : vector<2x8xf32> to vector<2x8x1xf32>
    %83 = vector.broadcast %82 : vector<2x8x1xf32> to vector<2x8x8xf32>
    %84 = arith.divf %80, %83 : vector<2x8x8xf32>
    %85 = arith.truncf %84 : vector<2x8x8xf32> to vector<2x8x8xbf16>
    "tpu.trace_start"() <{level = 10 : i32, message = "bqk,bkd->bqd"}> : () -> ()
    %cst_23 = arith.constant dense<0.000000e+00> : vector<2x8x16xf32>
    %86 = tpu.matmul %85, %68, %cst_23 {dimension_numbers = #tpu.dot_dimension_numbers<[2], [1], [1], [2], [0, 0, 0, 1, 1, 2], [0], [0]>} : vector<2x8x8xbf16>, vector<2x8x16xbf16>, vector<2x8x16xf32> -> vector<2x8x16xf32>
    "tpu.trace_stop"() : () -> ()
    %87 = vector.shape_cast %86 : vector<2x8x16xf32> to vector<16x16xf32>
    %88 = vector.extract_strided_slice %59 {offsets = [0, 16], sizes = [16, 16], strides = [1, 1]} : vector<16x96xf32> to vector<16x16xf32>
    %89 = vector.shape_cast %88 : vector<16x16xf32> to vector<2x8x16xf32>
    %90 = arith.truncf %89 : vector<2x8x16xf32> to vector<2x8x16xbf16>
    %91 = vector.extract_strided_slice %59 {offsets = [0, 48], sizes = [16, 16], strides = [1, 1]} : vector<16x96xf32> to vector<16x16xf32>
    %92 = vector.shape_cast %91 : vector<16x16xf32> to vector<2x8x16xf32>
    %93 = arith.truncf %92 : vector<2x8x16xf32> to vector<2x8x16xbf16>
    %94 = vector.extract_strided_slice %59 {offsets = [0, 80], sizes = [16, 16], strides = [1, 1]} : vector<16x96xf32> to vector<16x16xf32>
    %95 = vector.shape_cast %94 : vector<16x16xf32> to vector<2x8x16xf32>
    %96 = arith.truncf %95 : vector<2x8x16xf32> to vector<2x8x16xbf16>
    "tpu.trace_start"() <{level = 10 : i32, message = "bqd,bkd->bqk"}> : () -> ()
    %cst_24 = arith.constant dense<0.000000e+00> : vector<2x8x8xf32>
    %97 = tpu.matmul %90, %93, %cst_24 {dimension_numbers = #tpu.dot_dimension_numbers<[2], [2], [1], [1], [0, 0, 0, 1, 1, 1], [0], [0]>} : vector<2x8x16xbf16>, vector<2x8x16xbf16>, vector<2x8x8xf32> -> vector<2x8x8xf32>
    "tpu.trace_stop"() : () -> ()
    %cst_25 = arith.constant 2.500000e-01 : f32
    %98 = vector.broadcast %cst_25 : f32 to vector<2x8x8xf32>
    %99 = arith.mulf %97, %98 : vector<2x8x8xf32>
    %100 = vector.broadcast %29 : vector<2x1x8xf32> to vector<2x8x8xf32>
    %101 = arith.addf %99, %100 : vector<2x8x8xf32>
    %cst_26 = arith.constant dense<0xFF800000> : vector<2x8xf32>
    %102 = vector.multi_reduction <maximumf>, %101, %cst_26 [2] : vector<2x8x8xf32> to vector<2x8xf32>
    %cst_27 = arith.constant 0xFF800000 : f32
    %103 = vector.broadcast %cst_27 : f32 to vector<2x8xf32>
    %104 = arith.maximumf %103, %102 : vector<2x8xf32>
    %105 = vector.shape_cast %104 : vector<2x8xf32> to vector<2x8x1xf32>
    %106 = vector.broadcast %105 : vector<2x8x1xf32> to vector<2x8x8xf32>
    %107 = arith.subf %101, %106 : vector<2x8x8xf32>
    %108 = math.exp %107 : vector<2x8x8xf32>
    %cst_28 = arith.constant dense<0.000000e+00> : vector<2x8xf32>
    %109 = vector.multi_reduction <add>, %108, %cst_28 [2] : vector<2x8x8xf32> to vector<2x8xf32>
    %110 = vector.shape_cast %109 : vector<2x8xf32> to vector<2x8x1xf32>
    %111 = vector.broadcast %110 : vector<2x8x1xf32> to vector<2x8x8xf32>
    %112 = arith.divf %108, %111 : vector<2x8x8xf32>
    %113 = arith.truncf %112 : vector<2x8x8xf32> to vector<2x8x8xbf16>
    "tpu.trace_start"() <{level = 10 : i32, message = "bqk,bkd->bqd"}> : () -> ()
    %cst_29 = arith.constant dense<0.000000e+00> : vector<2x8x16xf32>
    %114 = tpu.matmul %113, %96, %cst_29 {dimension_numbers = #tpu.dot_dimension_numbers<[2], [1], [1], [2], [0, 0, 0, 1, 1, 2], [0], [0]>} : vector<2x8x8xbf16>, vector<2x8x16xbf16>, vector<2x8x16xf32> -> vector<2x8x16xf32>
    "tpu.trace_stop"() : () -> ()
    %115 = vector.shape_cast %114 : vector<2x8x16xf32> to vector<16x16xf32>
    %116 = tpu.concatenate %87, %115 in 1 : vector<16x16xf32>, vector<16x16xf32> -> vector<16x32xf32>
    %117 = arith.truncf %116 : vector<16x32xf32> to vector<16x32xbf16>
    %c0_30 = arith.constant 0 : index
    %c0_31 = arith.constant 0 : index
    %118 = vector.load %arg3[%c0_30, %c0_31] : memref<128x32xbf16, #tpu.memory_space<vmem>>, vector<32x32xbf16>
    %cst_32 = arith.constant dense<0.000000e+00> : vector<16x32xf32>
    %119 = tpu.matmul %117, %118, %cst_32 {dimension_numbers = #tpu.dot_dimension_numbers<[1], [0], [0], [1], [0, 0, 1, 1], [], []>} : vector<16x32xbf16>, vector<32x32xbf16>, vector<16x32xf32> -> vector<16x32xf32>
    %120 = vector.extract_strided_slice %0 {offsets = [9, 0], sizes = [1, 32], strides = [1, 1]} : vector<22x128xf32> to vector<1x32xf32>
    %121 = vector.broadcast %120 : vector<1x32xf32> to vector<16x32xf32>
    %122 = arith.addf %119, %121 : vector<16x32xf32>
    %123 = arith.addf %53, %122 : vector<16x32xf32>
    %124 = vector.extract_strided_slice %0 {offsets = [15, 0], sizes = [1, 32], strides = [1, 1]} : vector<22x128xf32> to vector<1x32xf32>
    %125 = vector.extract_strided_slice %0 {offsets = [16, 0], sizes = [1, 32], strides = [1, 1]} : vector<22x128xf32> to vector<1x32xf32>
    %cst_33 = arith.constant dense<0.000000e+00> : vector<16xf32>
    %126 = vector.multi_reduction <add>, %123, %cst_33 [1] : vector<16x32xf32> to vector<16xf32>
    %127 = vector.shape_cast %126 : vector<16xf32> to vector<16x1xf32>
    %cst_34 = arith.constant 3.200000e+01 : f32
    %128 = vector.broadcast %cst_34 : f32 to vector<16x1xf32>
    %129 = arith.divf %127, %128 : vector<16x1xf32>
    %130 = vector.broadcast %129 : vector<16x1xf32> to vector<16x32xf32>
    %131 = arith.subf %123, %130 : vector<16x32xf32>
    %132 = arith.mulf %131, %131 : vector<16x32xf32>
    %cst_35 = arith.constant dense<0.000000e+00> : vector<16xf32>
    %133 = vector.multi_reduction <add>, %132, %cst_35 [1] : vector<16x32xf32> to vector<16xf32>
    %134 = vector.shape_cast %133 : vector<16xf32> to vector<16x1xf32>
    %cst_36 = arith.constant 3.200000e+01 : f32
    %135 = vector.broadcast %cst_36 : f32 to vector<16x1xf32>
    %136 = arith.divf %134, %135 : vector<16x1xf32>
    %137 = vector.broadcast %129 : vector<16x1xf32> to vector<16x32xf32>
    %138 = arith.subf %123, %137 : vector<16x32xf32>
    %cst_37 = arith.constant 9.99999996E-13 : f32
    %139 = vector.broadcast %cst_37 : f32 to vector<16x1xf32>
    %140 = arith.addf %136, %139 : vector<16x1xf32>
    %141 = math.rsqrt %140 : vector<16x1xf32>
    %142 = vector.broadcast %141 : vector<16x1xf32> to vector<16x32xf32>
    %143 = arith.mulf %138, %142 : vector<16x32xf32>
    %144 = vector.broadcast %124 : vector<1x32xf32> to vector<16x32xf32>
    %145 = arith.mulf %143, %144 : vector<16x32xf32>
    %146 = vector.broadcast %125 : vector<1x32xf32> to vector<16x32xf32>
    %147 = arith.addf %145, %146 : vector<16x32xf32>
    %148 = arith.truncf %147 : vector<16x32xf32> to vector<16x32xbf16>
    %c0_38 = arith.constant 0 : index
    %c0_39 = arith.constant 0 : index
    %149 = vector.load %arg4[%c0_38, %c0_39] : memref<32x64xbf16, #tpu.memory_space<vmem>>, vector<32x64xbf16>
    %cst_40 = arith.constant dense<0.000000e+00> : vector<16x64xf32>
    %150 = tpu.matmul %148, %149, %cst_40 {dimension_numbers = #tpu.dot_dimension_numbers<[1], [0], [0], [1], [0, 0, 1, 1], [], []>} : vector<16x32xbf16>, vector<32x64xbf16>, vector<16x64xf32> -> vector<16x64xf32>
    %151 = vector.extract_strided_slice %0 {offsets = [10, 0], sizes = [1, 64], strides = [1, 1]} : vector<22x128xf32> to vector<1x64xf32>
    %152 = vector.broadcast %151 : vector<1x64xf32> to vector<16x64xf32>
    %153 = arith.addf %150, %152 : vector<16x64xf32>
    %154 = arith.mulf %153, %153 : vector<16x64xf32>
    %155 = arith.mulf %153, %154 : vector<16x64xf32>
    %cst_41 = arith.constant 4.471500e-02 : f32
    %156 = vector.broadcast %cst_41 : f32 to vector<16x64xf32>
    %157 = arith.mulf %156, %155 : vector<16x64xf32>
    %158 = arith.addf %153, %157 : vector<16x64xf32>
    %cst_42 = arith.constant 0.797884583 : f32
    %159 = vector.broadcast %cst_42 : f32 to vector<16x64xf32>
    %160 = arith.mulf %159, %158 : vector<16x64xf32>
    %161 = math.tanh %160 : vector<16x64xf32>
    %cst_43 = arith.constant 1.000000e+00 : f32
    %162 = vector.broadcast %cst_43 : f32 to vector<16x64xf32>
    %163 = arith.addf %162, %161 : vector<16x64xf32>
    %cst_44 = arith.constant 5.000000e-01 : f32
    %164 = vector.broadcast %cst_44 : f32 to vector<16x64xf32>
    %165 = arith.mulf %164, %163 : vector<16x64xf32>
    %166 = arith.mulf %153, %165 : vector<16x64xf32>
    %167 = arith.truncf %166 : vector<16x64xf32> to vector<16x64xbf16>
    %c32 = arith.constant 32 : index
    %c0_45 = arith.constant 0 : index
    %168 = vector.load %arg3[%c32, %c0_45] : memref<128x32xbf16, #tpu.memory_space<vmem>>, vector<64x32xbf16>
    %cst_46 = arith.constant dense<0.000000e+00> : vector<16x32xf32>
    %169 = tpu.matmul %167, %168, %cst_46 {dimension_numbers = #tpu.dot_dimension_numbers<[1], [0], [0], [1], [0, 0, 1, 1], [], []>} : vector<16x64xbf16>, vector<64x32xbf16>, vector<16x32xf32> -> vector<16x32xf32>
    %170 = vector.extract_strided_slice %0 {offsets = [11, 0], sizes = [1, 32], strides = [1, 1]} : vector<22x128xf32> to vector<1x32xf32>
    %171 = vector.broadcast %170 : vector<1x32xf32> to vector<16x32xf32>
    %172 = arith.addf %169, %171 : vector<16x32xf32>
    %173 = arith.addf %147, %172 : vector<16x32xf32>
    %174 = vector.extract_strided_slice %0 {offsets = [17, 0], sizes = [1, 32], strides = [1, 1]} : vector<22x128xf32> to vector<1x32xf32>
    %175 = vector.extract_strided_slice %0 {offsets = [18, 0], sizes = [1, 32], strides = [1, 1]} : vector<22x128xf32> to vector<1x32xf32>
    %cst_47 = arith.constant dense<0.000000e+00> : vector<16xf32>
    %176 = vector.multi_reduction <add>, %173, %cst_47 [1] : vector<16x32xf32> to vector<16xf32>
    %177 = vector.shape_cast %176 : vector<16xf32> to vector<16x1xf32>
    %cst_48 = arith.constant 3.200000e+01 : f32
    %178 = vector.broadcast %cst_48 : f32 to vector<16x1xf32>
    %179 = arith.divf %177, %178 : vector<16x1xf32>
    %180 = vector.broadcast %179 : vector<16x1xf32> to vector<16x32xf32>
    %181 = arith.subf %173, %180 : vector<16x32xf32>
    %182 = arith.mulf %181, %181 : vector<16x32xf32>
    %cst_49 = arith.constant dense<0.000000e+00> : vector<16xf32>
    %183 = vector.multi_reduction <add>, %182, %cst_49 [1] : vector<16x32xf32> to vector<16xf32>
    %184 = vector.shape_cast %183 : vector<16xf32> to vector<16x1xf32>
    %cst_50 = arith.constant 3.200000e+01 : f32
    %185 = vector.broadcast %cst_50 : f32 to vector<16x1xf32>
    %186 = arith.divf %184, %185 : vector<16x1xf32>
    %187 = vector.broadcast %179 : vector<16x1xf32> to vector<16x32xf32>
    %188 = arith.subf %173, %187 : vector<16x32xf32>
    %cst_51 = arith.constant 9.99999996E-13 : f32
    %189 = vector.broadcast %cst_51 : f32 to vector<16x1xf32>
    %190 = arith.addf %186, %189 : vector<16x1xf32>
    %191 = math.rsqrt %190 : vector<16x1xf32>
    %192 = vector.broadcast %191 : vector<16x1xf32> to vector<16x32xf32>
    %193 = arith.mulf %188, %192 : vector<16x32xf32>
    %194 = vector.broadcast %174 : vector<1x32xf32> to vector<16x32xf32>
    %195 = arith.mulf %193, %194 : vector<16x32xf32>
    %196 = vector.broadcast %175 : vector<1x32xf32> to vector<16x32xf32>
    %197 = arith.addf %195, %196 : vector<16x32xf32>
    %198 = arith.truncf %197 : vector<16x32xf32> to vector<16x32xbf16>
    %c96 = arith.constant 96 : index
    %c0_52 = arith.constant 0 : index
    %199 = vector.load %arg3[%c96, %c0_52] : memref<128x32xbf16, #tpu.memory_space<vmem>>, vector<32x32xbf16>
    %cst_53 = arith.constant dense<0.000000e+00> : vector<16x32xf32>
    %200 = tpu.matmul %198, %199, %cst_53 {dimension_numbers = #tpu.dot_dimension_numbers<[1], [0], [0], [1], [0, 0, 1, 1], [], []>} : vector<16x32xbf16>, vector<32x32xbf16>, vector<16x32xf32> -> vector<16x32xf32>
    %201 = vector.extract_strided_slice %0 {offsets = [12, 0], sizes = [1, 32], strides = [1, 1]} : vector<22x128xf32> to vector<1x32xf32>
    %202 = vector.broadcast %201 : vector<1x32xf32> to vector<16x32xf32>
    %203 = arith.addf %200, %202 : vector<16x32xf32>
    %204 = math.tanh %203 : vector<16x32xf32>
    %205 = vector.shape_cast %204 : vector<16x32xf32> to vector<2x8x32xf32>
    %206 = vector.extract_strided_slice %0 {offsets = [19, 0], sizes = [1, 32], strides = [1, 1]} : vector<22x128xf32> to vector<1x32xf32>
    %207 = vector.shape_cast %206 : vector<1x32xf32> to vector<1x1x32xf32>
    %208 = vector.broadcast %207 : vector<1x1x32xf32> to vector<2x8x32xf32>
    %209 = arith.mulf %205, %208 : vector<2x8x32xf32>
    %cst_54 = arith.constant dense<0.000000e+00> : vector<2x8xf32>
    %210 = vector.multi_reduction <add>, %209, %cst_54 [2] : vector<2x8x32xf32> to vector<2x8xf32>
    %cst_55 = arith.constant 0.000000e+00 : f32
    %211 = vector.broadcast %cst_55 : f32 to vector<2x8xf32>
    %212 = arith.cmpf ogt, %24, %211 : vector<2x8xf32>
    %cst_56 = arith.constant -1.000000e+30 : f32
    %213 = vector.broadcast %cst_56 : f32 to vector<2x8xf32>
    %214 = arith.select %212, %210, %213 : vector<2x8xi1>, vector<2x8xf32>
    %cst_57 = arith.constant dense<0xFF800000> : vector<2xf32>
    %215 = vector.multi_reduction <maximumf>, %214, %cst_57 [1] : vector<2x8xf32> to vector<2xf32>
    %cst_58 = arith.constant 0xFF800000 : f32
    %216 = vector.broadcast %cst_58 : f32 to vector<2xf32>
    %217 = arith.maximumf %216, %215 : vector<2xf32>
    %218 = vector.shape_cast %217 : vector<2xf32> to vector<2x1xf32>
    %219 = vector.broadcast %218 : vector<2x1xf32> to vector<2x8xf32>
    %220 = arith.subf %214, %219 : vector<2x8xf32>
    %221 = math.exp %220 : vector<2x8xf32>
    %cst_59 = arith.constant dense<0.000000e+00> : vector<2xf32>
    %222 = vector.multi_reduction <add>, %221, %cst_59 [1] : vector<2x8xf32> to vector<2xf32>
    %223 = vector.shape_cast %222 : vector<2xf32> to vector<2x1xf32>
    %224 = vector.broadcast %223 : vector<2x1xf32> to vector<2x8xf32>
    %225 = arith.divf %221, %224 : vector<2x8xf32>
    %226 = vector.shape_cast %225 : vector<2x8xf32> to vector<2x1x8xf32>
    "tpu.trace_start"() <{level = 10 : i32, message = "bqs,bsd->bqd"}> : () -> ()
    %cst_60 = arith.constant dense<0.000000e+00> : vector<2x1x32xf32>
    %227 = tpu.matmul %226, %205, %cst_60 {dimension_numbers = #tpu.dot_dimension_numbers<[2], [1], [1], [2], [0, 0, 0, 1, 1, 2], [0], [0]>} : vector<2x1x8xf32>, vector<2x8x32xf32>, vector<2x1x32xf32> -> vector<2x1x32xf32>
    "tpu.trace_stop"() : () -> ()
    %228 = vector.broadcast %227 : vector<2x1x32xf32> to vector<2x16x32xf32>
    %229 = arith.mulf %22, %228 : vector<2x16x32xf32>
    %cst_61 = arith.constant dense<0.000000e+00> : vector<2x16xf32>
    %230 = vector.multi_reduction <add>, %229, %cst_61 [2] : vector<2x16x32xf32> to vector<2x16xf32>
    %cst_62 = arith.constant dense<0xFF800000> : vector<2xf32>
    %231 = vector.multi_reduction <maximumf>, %230, %cst_62 [1] : vector<2x16xf32> to vector<2xf32>
    %232 = vector.shape_cast %231 : vector<2xf32> to vector<2x1xf32>
    %233 = vector.broadcast %232 : vector<2x1xf32> to vector<2x16xf32>
    %234 = arith.subf %230, %233 : vector<2x16xf32>
    %235 = math.exp %234 : vector<2x16xf32>
    %cst_63 = arith.constant dense<0.000000e+00> : vector<2xf32>
    %236 = vector.multi_reduction <add>, %235, %cst_63 [1] : vector<2x16xf32> to vector<2xf32>
    %237 = vector.shape_cast %236 : vector<2xf32> to vector<2x1xf32>
    %238 = math.log %237 : vector<2x1xf32>
    %239 = arith.addf %232, %238 : vector<2x1xf32>
    %240 = tpu.iota {dimensions = array<i32: 1>} : vector<2x16xi32>
    %241 = vector.broadcast %23 : vector<2x1xi32> to vector<2x16xi32>
    %242 = arith.cmpi eq, %240, %241 : vector<2x16xi32>
    %cst_64 = arith.constant 0.000000e+00 : f32
    %243 = vector.broadcast %cst_64 : f32 to vector<2x16xf32>
    %244 = arith.select %242, %230, %243 : vector<2x16xi1>, vector<2x16xf32>
    %cst_65 = arith.constant dense<0.000000e+00> : vector<2xf32>
    %245 = vector.multi_reduction <add>, %244, %cst_65 [1] : vector<2x16xf32> to vector<2xf32>
    %246 = vector.shape_cast %245 : vector<2xf32> to vector<2x1xf32>
    %247 = arith.subf %239, %246 : vector<2x1xf32>
    %cst_66 = arith.constant 0.000000e+00 : f32
    %248 = vector.broadcast %cst_66 : f32 to vector<2x103xf32>
    %249 = tpu.concatenate %230, %225, %247, %248 in 1 : vector<2x16xf32>, vector<2x8xf32>, vector<2x1xf32>, vector<2x103xf32> -> vector<2x128xf32>
    %c0_67 = arith.constant 0 : index
    %c0_68 = arith.constant 0 : index
    %250 = vector.load %arg6[%c0_67, %c0_68] : memref<2x128xf32, #tpu.memory_space<vmem>>, vector<2x128xf32>
    tpu.vector_store %arg6[%c0_67, %c0_68], %249 {strides = array<i32>} : memref<2x128xf32, #tpu.memory_space<vmem>>, vector<2x128xf32>,
    return
  }
}

</mosaic_0001>

<bundles_post_ra>
// kernel: bert_pretrained_classifier_forward.1
= control target key start
LH: loop header
LB: loop body
LE: loop exit
PB: predicated region body
PF: predicated region fallthrough
CT: control target
= control target key end

     0   :  { %v1910_v0 = vmov 0   ;;  %v1911_v11 = vmov 0.0   ;;  %v37_v12 = vlaneseq  ;;  %vm51_vm0 = vcmask 523264   ;;  %s1913_s7 = smov 96   ;;  %s1916_s10 = smov 80   ;;  %s2310_s0 = inlined_call_operand.vmem [shape: s32[50,1], index: 0, kind: input, shape index: {}]   ;;  %s2311_s1 = inlined_call_operand.vmem [shape: f32[64,32], index: 1, kind: input, shape index: {}]   ;;  %s2312_s5 = inlined_call_operand.vmem [shape: f32[22,128], index: 5, kind: input, shape index: {}]   ;;  %s2313_s2 = inlined_call_operand.vmem [shape: bf16[32,96], index: 2, kind: input, shape index: {}]   ;;  %s2314_s3 = inlined_call_operand.vmem [shape: bf16[128,32], index: 3, kind: input, shape index: {}]   ;;  %s2315_s4 = inlined_call_operand.vmem [shape: bf16[32,64], index: 4, kind: input, shape index: {}]   ;;  %s2316_s6 = inlined_call_operand.vmem [shape: f32[2,128], index: 6, kind: output, shape index: {}]  }
   0x1   :  { %1841 = vset.pattern.permute.xlu0 %v1910_v0  ;;  %v35_v1 = vld [vmem:[%s2310_s0] sm:$0xff]  ;;  %v34_v2 = vld [vmem:[%s2311_s1 + $0x38] sm:$0xff]  ;;  %1842 = vset.pattern.permute.xlu1 %v1910_v0  ;;  %v33_v3 = vld [vmem:[%s2311_s1 + $0x30] sm:$0xff]  ;;  %vm287_vm3 = vcmask 261120   ;;  %vm1912_vm4 = vmmov 0   ;;  %vm397_vm9 = vcmask 130048  }
   0x2   :  { %40 = vperm.xlu0 %1841, %v35_v1   ;;  %1688 = vmatprep.subr.mxu0 %v34_v2  ;;  %v36_v4 = vld [vmem:[%s2310_s0 + $0x8] sm:$0xff]  ;;  %v31_v6 = vld [vmem:[%s2311_s1 + $0x20] sm:$0xff]  ;;  %v30_v7 = vld [vmem:[%s2311_s1 + $0x18] sm:$0xff]  ;;  %v1987_v13 = vand.u32 127, %v37_v12  ;;  %v2024_v47 = vshrl.u32 %v37_v12, 7  ;;  %vm507_vm10 = vcmask 64512  }
   0x3   :  { %1689 = vmatpush3.msra.mxu0 %v34_v2  ;;  %v32_v5 = vld [vmem:[%s2311_s1 + $0x28] sm:$0xff]  ;;  %1707 = vmatprep.subr.mxu1 %v34_v2  ;;  %v29_v8 = vld [vmem:[%s2311_s1 + $0x10] sm:$0xff]  ;;  %v27_v10 = vld [vmem:[%s2311_s1] sm:$0xff]  ;;  %s1917_s11 = smov 112   ;;  %vm537_vm11 = vcmask 1043456   ;;  %s1918_s12 = smov 48  }
   0x4   :  { %1690 = vmatprep.subr.mxu0 %v33_v3  ;;  %1708 = vmatpush3.msra.mxu1 %v34_v2  ;;  %v28_v9 = vld [vmem:[%s2311_s1 + $0x8] sm:$0xff]  ;;  %v24_v19 = vld [vmem:[%s2312_s5] sm:$0xff]  ;;  %v135_v37 = vld [vmem:[%s2310_s0 + $0x10] sm:$0xff]  ;;  %v317_v48 = vsub.s32 5, %v2024_v47  ;;  %v323_v53 = vsub.s32 6, %v2024_v47  ;;  %s1919_s1 = smov 16  }
   0x5   :  { %1691 = vmatpush3.msra.mxu0 %v33_v3  ;;  %1709 = vmatprep.subr.mxu1 %v33_v3  ;;  %v1848_v35 = vld [vmem:[%s2313_s2 + $0x8] sm:$0xff]   ;;  %v1849_v36 = vld [vmem:[%s2313_s2] sm:$0xff]   ;;  %v136_v38 = vld [vmem:[%s2310_s0 + $0x18] sm:$0xff]  ;;  %vm1262_vm12 = vcmask 1045509   ;;  %vm1266_vm14 = vcmask 62468   ;;  %vm1483_vm15 = vcmask 130112  }
   0x6   :  { %43 = vperm.xlu0 %1841, %v36_v4   ;;  %1692 = vmatprep.subr.mxu0 %v32_v5  ;;  %v137_v39 = vld [vmem:[%s2310_s0 + $0x20] sm:$0xff]  ;;  %v138_v40 = vld [vmem:[%s2310_s0 + $0x28] sm:$0xff] }
   0x7   :  { %1693 = vmatpush3.msra.mxu0 %v32_v5  ;;  %1710 = vmatpush3.msra.mxu1 %v33_v3  ;;  %v2030_v49 = vld [vmem:[%s2312_s5 + $0x8] sm:$0xff] }
   0x8   :  { %1694 = vmatprep.subr.mxu0 %v31_v6  ;;  %1711 = vmatprep.subr.mxu1 %v32_v5  ;;  %v318_v52 = vrot.slane %v2030_v49, %v317_v48  ;;  %v324_v57 = vrot.slane %v2030_v49, %v323_v53 }
   0x9   :  { %1695 = vmatpush3.msra.mxu0 %v31_v6  ;;  %1712 = vmatpush3.msra.mxu1 %v32_v5 }
   0xa   :  { %1696 = vmatprep.subr.mxu0 %v30_v7  ;;  %1713 = vmatprep.subr.mxu1 %v31_v6 }
   0xb   :  { %1697 = vmatpush3.msra.mxu0 %v30_v7  ;;  %1714 = vmatpush3.msra.mxu1 %v31_v6  ;;  %v2059_v6 = vsub.s32 0, %v2024_v47 }
   0xc   :  { %1698 = vmatprep.subr.mxu0 %v29_v8  ;;  %1715 = vmatprep.subr.mxu1 %v30_v7 }
   0xd   :  { %1699 = vmatpush3.msra.mxu0 %v29_v8  ;;  %1716 = vmatpush3.msra.mxu1 %v30_v7  ;;  %v335_v7 = vrot.slane %v2030_v49, %v2059_v6 }
   0xe   :  { %1700 = vmatprep.subr.mxu0 %v28_v9  ;;  %1717 = vmatprep.subr.mxu1 %v29_v8 }
   0xf   :  { %1701 = vmatpush3.msra.mxu0 %v28_v9  ;;  %1718 = vmatpush3.msra.mxu1 %v29_v8 }
  0x10   :  { %1702 = vmatprep.subr.mxu0 %v27_v10  ;;  %1719 = vmatprep.subr.mxu1 %v28_v9 }
  0x11   :  { %1703 = vmatpush3.msra.mxu0 %v27_v10  ;;  %1720 = vmatpush3.msra.mxu1 %v28_v9 }
  0x12   :  { %1729 = vmatprep.subr.bf16.mxu0 %v1911_v11  ;;  %1721 = vmatprep.subr.mxu1 %v27_v10 }
  0x13   :  { %1722 = vmatpush3.msra.mxu1 %v27_v10 }
  0x14   :  { %1737 = vmatprep.subr.bf16.mxu1 %v1911_v11 }
  0x7d   :  { %v41_v14 = vpop.permute.xlu0 %40 }
  0x7e   :  { %vm45_vm1 = vcmp.eq.s32.totalorder %v1987_v13, %v41_v14 }
  0x7f   :  { %v1589_v15 = vsel %vm45_vm1, 1.0, %v1911_v11  ;;  %vm1497_vm1 = vcmask 123904  }
  0x80   :  { %1704 = vmatprep.mubr.msk.f32.mxu0 %vm51_vm0, %v1589_v15 }
  0x81   :  { %v44_v16 = vpop.permute.xlu0 %43 }
  0x82   :  { %vm46_vm2 = vcmp.eq.s32.totalorder %v1987_v13, %v44_v16 }
  0x83   :  { %v1590_v17 = vsel %vm46_vm2, 1.0, %v1911_v11 }
  0x84   :  { %1705 = vmatmul.mubr.msk.f32.vlgmr.msra.gmra.mxu0 %vm51_vm0, %v1590_v17 }
  0x85   :  { %1730 = vmatpush3.bf16.msra.mxu0 %v1848_v35  ;;  %1733 = vmatprep.mubr.msk.bf16.mxu0 %vm1912_vm4, %v1911_v11 }
  0x86   :  { %1731 = vmatprep.subr.bf16.mxu0 %v1911_v11 }
  0x89   :  { %1732 = vmatpush3.bf16.msra.mxu0 %v1849_v36 }
  0x8a   :  { %1743 = vmatprep.subr.bf16.mxu0 %v1911_v11 }
 0x144   :  { %v1706_v18 = vpop.f32.mrf.mxu0 }
 0x145   :  { %v134_v22 = vadd.f32 %v1706_v18, %v24_v19 }
 0x146   :  { %v124_v20 = vpop.f32.mrf.mxu0 }
 0x147   :  { %v133_v21 = vadd.f32 %v124_v20, %v24_v19  ;;  %v291_v24 = vsel %vm287_vm3, %v134_v22, 0.0 }
 0x149   :  { %v288_v23 = vsel %vm287_vm3, %v133_v21, 0.0 }
 0x14a   :  { %289 = vadd.xlane.f32.xlu1 %v288_v23 }
 0x14e   :  { %292 = vadd.xlane.f32.xlu1 %v291_v24  ;;  %v1914_v24 = vmov 1966171168  }
 0x1d3   :  { %v290_v25 = vpop.xlane.xlu1 %289 }
 0x1d4   :  { %v295_v26 = vmul.f32 0.03125, %v290_v25  ;;  %v266_v25 = vunpack.c.l.s4 %v1914_v24 }
 0x1d6   :  { %v297_v27 = vsub.f32 %v133_v21, %v295_v26 }
 0x1d7   :  { %v293_v28 = vpop.xlane.xlu1 %292 }
 0x1d8   :  { %v296_v29 = vmul.f32 0.03125, %v293_v28  ;;  %v299_v30 = vmul.f32 %v297_v27, %v297_v27 }
 0x1da   :  { %v298_v31 = vsub.f32 %v134_v22, %v296_v29  ;;  %v301_v32 = vsel %vm287_vm3, %v299_v30, 0.0  ;;  %v2084_v22 = vld [vmem:[%s2312_s5 + $0x10] sm:$0x3f]  ;;  %s1915_s5 = smov 64  }
 0x1db   :  { %302 = vadd.xlane.f32.xlu0 %v301_v32  ;;  %v1601_v23 = vadd.f32 -1.0, %v2084_v22  ;;  %vm1251_vm13 = vcmp.gt.f32.partialorder %v2084_v22, 0.0 }
 0x1dc   :  { %v300_v33 = vmul.f32 %v298_v31, %v298_v31 }
 0x1dd   :  { %v262_v26 = vmul.f32 1e+09, %v1601_v23 }
 0x1de   :  { %v304_v34 = vsel %vm287_vm3, %v300_v33, 0.0 }
 0x1df   :  { %305 = vadd.xlane.f32.xlu1 %v304_v34  ;;  %v264_v29 = vcombine.high %v262_v26, %v262_v26 }
 0x1f0   :  { %140 = vperm.xlu1 %1842, %v135_v37  }
 0x1f4   :  { %143 = vperm.xlu1 %1842, %v136_v38  }
 0x1f8   :  { %146 = vperm.xlu1 %1842, %v137_v39  }
 0x1fc   :  { %149 = vperm.xlu1 %1842, %v138_v40  }
 0x264   :  { %v303_v41 = vpop.xlane.xlu0 %302 }
 0x265   :  { %v307_v42 = vmul.f32 0.03125, %v303_v41 }
 0x267   :  { %v309_v43 = vadd.f32 1e-12, %v307_v42 }
 0x268   :  { %v306_v44 = vpop.xlane.xlu1 %305 }
 0x269   :  { %1860 = vrsqrt.f32 %v309_v43  ;;  %v308_v45 = vmul.f32 0.03125, %v306_v44 }
 0x26b   :  { %v310_v46 = vadd.f32 1e-12, %v308_v45 }
 0x26c   :  { %v141_v62 = vpop.permute.xlu1 %140 }
 0x26d   :  { %1862 = vrsqrt.f32 %v310_v46  ;;  %vm151_vm5 = vcmp.eq.s32.totalorder %v1987_v13, %v141_v62 }
 0x26e   :  { %v1593_v63 = vsel %vm151_vm5, 1.0, %v1911_v11 }
 0x26f   :  { %1723 = vmatprep.mubr.msk.f32.mxu1 %vm51_vm0, %v1593_v63 }
 0x270   :  { %v144_v0 = vpop.permute.xlu1 %143 }
 0x271   :  { %vm152_vm6 = vcmp.eq.s32.totalorder %v1987_v13, %v144_v0 }
 0x272   :  { %v1594_v1 = vsel %vm152_vm6, 1.0, %v1911_v11 }
 0x273   :  { %1724 = vmatmul.mubr.msk.f32.vlgmr.msra.gmra.mxu1 %vm51_vm0, %v1594_v1 }
 0x274   :  { %v147_v2 = vpop.permute.xlu1 %146 }
 0x275   :  { %vm153_vm7 = vcmp.eq.s32.totalorder %v1987_v13, %v147_v2 }
 0x276   :  { %v1861_v50 = vpop.eup %1860  ;;  %v1595_v3 = vsel %vm153_vm7, 1.0, %v1911_v11 }
 0x277   :  { %v313_v51 = vmul.f32 %v1861_v50, %v297_v27  ;;  %1726 = vmatprep.mubr.msk.f32.mxu1 %vm51_vm0, %v1595_v3  ;;  %v267_v27 = vunpack.c.0.s8 %v266_v25 }
 0x278   :  { %v150_v4 = vpop.permute.xlu1 %149 }
 0x279   :  { %v319_v56 = vmul.f32 %v318_v52, %v313_v51  ;;  %vm154_vm8 = vcmp.eq.s32.totalorder %v1987_v13, %v150_v4  ;;  %v2090_v30 = vsub.s32 %v267_v27, %v2024_v47 }
 0x27a   :  { %v1863_v54 = vpop.eup %1862  ;;  %v1596_v5 = vsel %vm154_vm8, 1.0, %v1911_v11 }
 0x27b   :  { %v314_v55 = vmul.f32 %v1863_v54, %v298_v31  ;;  %v2035_v59 = vadd.f32 %v324_v57, %v319_v56  ;;  %1727 = vmatmul.mubr.msk.f32.gmra.mxu1 %vm51_vm0, %v1596_v5  ;;  %v271_v32 = vrot.slane %v264_v29, %v2090_v30 }
 0x27c   :  { %1739 = vmatprep.mubr.msk.bf16.mxu1 %vm1912_vm4, %v1911_v11 }
 0x27d   :  { %v320_v58 = vmul.f32 %v318_v52, %v314_v55  ;;  %v279_v34 = vrot.slane %v271_v32, %v2090_v30  ;;  %v272_v35 = vcombine.high %v271_v32, %v271_v32 }
 0x27f   :  { %v2037_v60 = vadd.f32 %v324_v57, %v320_v58  ;;  %v2101_v37 = vrot.slane %v279_v34, %v2059_v6  ;;  %v286_v38 = vrot.slane %v272_v35, %v2090_v30 }
 0x281   :  { %v327_v61 = vpack.c.bf16 %v2037_v60, %v2035_v59  ;;  %v2106_v43 = vrot.slane %v286_v38, %v2059_v6 }
 0x283   :  { %1734 = vmatmul.mubr.msk.bf16.vlgmr.msra.gmra.mxu0 %vm287_vm3, %v327_v61 }
 0x284   :  { %1745 = vmatprep.mubr.msk.bf16.mxu0 %vm1912_vm4, %v1911_v11 }
 0x333   :  { %v2087_v28 = vpop.f32.mrf.mxu1 }
 0x335   :  { %v2092_v31 = vpop.f32.mrf.mxu1 }
 0x33b   :  { %v2095_v33 = vpop.f32.mrf.mxu1 }
 0x33d   :  { %v2098_v36 = vpop.f32.mrf.mxu1 }
 0x343   :  { %v385_v8 = vpop.f32.mrf.mxu0 }
 0x344   :  { %v386_v9 = vadd.f32 %v385_v8, %v335_v7 }
 0x345   :  { %v1735_v10 = vpop.f32.mrf.mxu0 }
 0x346   :  { %v2063_v12 = vpack.c.bf16 %v386_v9, %v386_v9 }
 0x347   :  { %v388_v14 = vpop.f32.mrf.mxu0 }
 0x348   :  { %v389_v15 = vadd.f32 %v388_v14, %v335_v7  ;;  %395 = vrot.lane.b32.xlu0 %v2063_v12, %s1913_s7 }
 0x349   :  { %v1736_v16 = vpop.f32.mrf.mxu0 }
 0x34a   :  { %v2066_v17 = vpack.c.bf16 %v389_v15, %v389_v15 }
 0x34c   :  { %445 = vrot.lane.b32.xlu1 %v2066_v17, %s1913_s7 }
 0x3ba   :  { %v396_v18 = vpop.permute.xlu0 %395 }
 0x3bb   :  { %v402_v19 = vsel %vm397_vm9, %v396_v18, 0 }
 0x3bc   :  { %1738 = vmatpush3.bf16.xpose.msra.mxu1 %v402_v19 }
 0x3bd   :  { %1749 = vmatprep.subr.bf16.mxu1 %v1911_v11 }
 0x3be   :  { %v446_v20 = vpop.permute.xlu1 %445 }
 0x3bf   :  { %v451_v21 = vsel %vm397_vm9, %v446_v20, 0 }
 0x3c0   :  { %1744 = vmatpush3.bf16.xpose.msra.mxu0 %v451_v21 }
 0x3c1   :  { %1755 = vmatprep.subr.bf16.mxu0 %v1911_v11 }
 0x3c3   :  { %1740 = vmatmul.mubr.msk.bf16.vlgmr.msra.gmra.mxu1 %vm397_vm9, %v2063_v12 }
 0x3c4   :  { %1751 = vmatprep.mubr.msk.bf16.mxu1 %vm1912_vm4, %v1911_v11 }
 0x3c7   :  { %1746 = vmatmul.mubr.msk.bf16.vlgmr.msra.gmra.mxu0 %vm397_vm9, %v2066_v17 }
 0x3c8   :  { %1757 = vmatprep.mubr.msk.bf16.mxu0 %vm1912_vm4, %v1911_v11 }
 0x483   :  { %v438_v39 = vpop.f32.mrf.mxu1 }
 0x484   :  { %v493_v40 = vmul.f32 0.25, %v438_v39 }
 0x485   :  { %v1741_v41 = vpop.f32.mrf.mxu1 }
 0x486   :  { %v505_v42 = vadd.f32 %v2101_v37, %v493_v40 }
 0x487   :  { %v441_v44 = vpop.f32.mrf.mxu1  ;;  %v487_v45 = vpop.f32.mrf.mxu0 }
 0x488   :  { %v494_v46 = vmul.f32 0.25, %v487_v45  ;;  %v508_v48 = vsel %vm507_vm10, %v505_v42, -inf }
 0x489   :  { %509 = vmax.xlane.f32.xlu1 %v508_v48  ;;  %v1742_v50 = vpop.f32.mrf.mxu1  ;;  %v1747_v51 = vpop.f32.mrf.mxu0 }
 0x48a   :  { %v506_v52 = vadd.f32 %v2106_v43, %v494_v46 }
 0x48b   :  { %v490_v53 = vpop.f32.mrf.mxu0 }
 0x48c   :  { %v511_v54 = vsel %vm507_vm10, %v506_v52, -inf }
 0x48d   :  { %512 = vmax.xlane.f32.xlu0 %v511_v54  ;;  %v1748_v55 = vpop.f32.mrf.mxu0 }
 0x49a   :  { %532 = vrot.lane.b32.xlu1 %v2063_v12, %s1915_s5 }
 0x49e   :  { %631 = vrot.lane.b32.xlu1 %v2063_v12, %s1916_s10 }
 0x4a3   :  { %581 = vrot.lane.b32.xlu0 %v2066_v17, %s1915_s5 }
 0x4a7   :  { %629 = vrot.lane.b32.xlu0 %v2063_v12, %s1917_s11 }
 0x512   :  { %v510_v56 = vpop.xlane.xlu1 %509 }
 0x513   :  { %v514_v57 = vsub.f32 %v505_v42, %v510_v56 }
 0x515   :  { %v516_v58 = vmul.f32 1.442695, %v514_v57 }
 0x516   :  { %v513_v61 = vpop.xlane.xlu0 %512  ;;  %v533_v62 = vpop.permute.xlu1 %532 }
 0x517   :  { %1864 = vpow2.f32 %v516_v58  ;;  %v515_v63 = vsub.f32 %v506_v52, %v513_v61  ;;  %v539_v0 = vsel %vm537_vm11, %v533_v62, 0 }
 0x518   :  { %1750 = vmatpush3.bf16.msra.mxu1 %v539_v0 }
 0x519   :  { %v518_v1 = vmul.f32 1.442695, %v515_v63  ;;  %1761 = vmatprep.subr.bf16.mxu1 %v1911_v11 }
 0x51a   :  { %v582_v2 = vpop.permute.xlu0 %581  ;;  %v632_v9 = vpop.permute.xlu1 %631 }
 0x51b   :  { %1866 = vpow2.f32 %v518_v1  ;;  %v587_v3 = vsel %vm537_vm11, %v582_v2, 0  ;;  %v637_v20 = vsel %vm397_vm9, %v632_v9, 0 }
 0x51c   :  { %1756 = vmatpush3.bf16.msra.mxu0 %v587_v3 }
 0x51d   :  { %1767 = vmatprep.subr.bf16.mxu0 %v1911_v11 }
 0x51e   :  { %v630_v26 = vpop.permute.xlu0 %629 }
 0x524   :  { %v1865_v4 = vpop.eup %1864 }
 0x525   :  { %v520_v5 = vsel %vm507_vm10, %v1865_v4, 0.0 }
 0x526   :  { %521 = vadd.xlane.f32.xlu1 %v520_v5 }
 0x528   :  { %v1867_v7 = vpop.eup %1866 }
 0x529   :  { %v523_v8 = vsel %vm507_vm10, %v1867_v7, 0.0 }
 0x52a   :  { %524 = vadd.xlane.f32.xlu1 %v523_v8 }
 0x53b   :  { %681 = vrot.lane.b32.xlu1 %v2066_v17, %s1916_s10 }
 0x53f   :  { %679 = vrot.lane.b32.xlu1 %v2066_v17, %s1917_s11 }
 0x5af   :  { %v522_v10 = vpop.xlane.xlu1 %521 }
 0x5b0   :  { %1868 = vrcp.f32 %v522_v10 }
 0x5b3   :  { %v525_v14 = vpop.xlane.xlu1 %524 }
 0x5b4   :  { %1870 = vrcp.f32 %v525_v14 }
 0x5b7   :  { %v682_v23 = vpop.permute.xlu1 %681 }
 0x5b8   :  { %v687_v25 = vsel %vm397_vm9, %v682_v23, 0 }
 0x5bb   :  { %v680_v27 = vpop.permute.xlu1 %679 }
 0x5bd   :  { %v1869_v15 = vpop.eup %1868 }
 0x5be   :  { %v527_v16 = vmul.f32 %v1869_v15, %v1865_v4 }
 0x5c0   :  { %v530_v18 = vpack.c.bf16 %v527_v16, %v527_v16 }
 0x5c1   :  { %v1871_v19 = vpop.eup %1870 }
 0x5c2   :  { %1752 = vmatmul.mubr.msk.bf16.vlgmr.msra.gmra.mxu1 %vm507_vm10, %v530_v18  ;;  %v529_v21 = vmul.f32 %v1871_v19, %v1867_v7 }
 0x5c3   :  { %1762 = vmatpush3.bf16.xpose.msra.mxu1 %v637_v20  ;;  %1763 = vmatprep.mubr.msk.bf16.mxu1 %vm1912_vm4, %v1911_v11  ;;  %v1850_v20 = vld [vmem:[%s2314_s3 + $0x8] sm:$0xff]  }
 0x5c4   :  { %v531_v24 = vpack.c.bf16 %v529_v21, %v529_v21  ;;  %1773 = vmatprep.subr.bf16.mxu1 %v1911_v11  ;;  %v1851_v21 = vld [vmem:[%s2314_s3] sm:$0xff]  }
 0x5c6   :  { %1758 = vmatmul.mubr.msk.bf16.vlgmr.msra.gmra.mxu0 %vm507_vm10, %v531_v24 }
 0x5c7   :  { %1768 = vmatpush3.bf16.xpose.msra.mxu0 %v687_v25  ;;  %1769 = vmatprep.mubr.msk.bf16.mxu0 %vm1912_vm4, %v1911_v11 }
 0x5c8   :  { %1779 = vmatprep.subr.bf16.mxu0 %v1911_v11 }
 0x5ca   :  { %1764 = vmatmul.mubr.msk.bf16.vlgmr.msra.gmra.mxu1 %vm397_vm9, %v630_v26 }
 0x5cb   :  { %1775 = vmatprep.mubr.msk.bf16.mxu1 %vm1912_vm4, %v1911_v11 }
 0x5ce   :  { %1770 = vmatmul.mubr.msk.bf16.vlgmr.msra.gmra.mxu0 %vm397_vm9, %v680_v27 }
 0x5cf   :  { %1781 = vmatprep.mubr.msk.bf16.mxu0 %vm1912_vm4, %v1911_v11 }
 0x682   :  { %v2139_v29 = vpop.f32.mrf.mxu1 }
 0x684   :  { %v1753_v32 = vpop.f32.mrf.mxu1 }
 0x686   :  { %v578_v34 = vpop.f32.mrf.mxu1  ;;  %v2141_v35 = vpop.f32.mrf.mxu0 }
 0x688   :  { %v1754_v38 = vpop.f32.mrf.mxu1  ;;  %v1759_v39 = vpop.f32.mrf.mxu0 }
 0x68a   :  { %v626_v40 = vpop.f32.mrf.mxu0  ;;  %v673_v41 = vpop.f32.mrf.mxu1 }
 0x68b   :  { %v729_v42 = vmul.f32 0.25, %v673_v41 }
 0x68c   :  { %v1760_v44 = vpop.f32.mrf.mxu0  ;;  %v1765_v45 = vpop.f32.mrf.mxu1 }
 0x68d   :  { %v731_v46 = vadd.f32 %v729_v42, %v2101_v37 }
 0x68e   :  { %v676_v48 = vpop.f32.mrf.mxu1  ;;  %v723_v50 = vpop.f32.mrf.mxu0 }
 0x68f   :  { %v730_v51 = vmul.f32 0.25, %v723_v50  ;;  %v733_v52 = vsel %vm507_vm10, %v731_v46, -inf  ;;  %v2178_v48 = vsub.s32 1, %v2024_v47 }
 0x690   :  { %734 = vmax.xlane.f32.xlu0 %v733_v52  ;;  %v1766_v53 = vpop.f32.mrf.mxu1  ;;  %v1771_v54 = vpop.f32.mrf.mxu0 }
 0x691   :  { %v732_v55 = vadd.f32 %v730_v51, %v2106_v43  ;;  %v871_v50 = vrot.slane %v2030_v49, %v2178_v48 }
 0x692   :  { %v726_v56 = vpop.f32.mrf.mxu0 }
 0x693   :  { %v736_v57 = vsel %vm507_vm10, %v732_v55, -inf }
 0x694   :  { %737 = vmax.xlane.f32.xlu1 %v736_v57  ;;  %v1772_v58 = vpop.f32.mrf.mxu0 }
 0x6a5   :  { %757 = vrot.lane.b32.xlu1 %v2063_v12, %s1918_s12 }
 0x719   :  { %v735_v61 = vpop.xlane.xlu0 %734 }
 0x71a   :  { %v739_v37 = vsub.f32 %v731_v46, %v735_v61 }
 0x71c   :  { %v741_v62 = vmul.f32 1.442695, %v739_v37 }
 0x71d   :  { %v738_v63 = vpop.xlane.xlu1 %737 }
 0x71e   :  { %1872 = vpow2.f32 %v741_v62  ;;  %v740_v0 = vsub.f32 %v732_v55, %v738_v63 }
 0x720   :  { %v743_v1 = vmul.f32 1.442695, %v740_v0 }
 0x721   :  { %v758_v2 = vpop.permute.xlu1 %757 }
 0x722   :  { %1874 = vpow2.f32 %v743_v1  ;;  %v763_v3 = vsel %vm537_vm11, %v758_v2, 0 }
 0x723   :  { %1774 = vmatpush3.bf16.msra.mxu1 %v763_v3 }
 0x724   :  { %1785 = vmatprep.subr.bf16.mxu1 %v1911_v11 }
 0x72b   :  { %v1873_v43 = vpop.eup %1872 }
 0x72c   :  { %v745_v4 = vsel %vm507_vm10, %v1873_v43, 0.0 }
 0x72d   :  { %746 = vadd.xlane.f32.xlu0 %v745_v4  ;;  %v1853_v4 = vld [vmem:[%s2315_s4] sm:$0xff]  }
 0x72f   :  { %v1875_v5 = vpop.eup %1874 }
 0x730   :  { %v748_v12 = vsel %vm507_vm10, %v1875_v5, 0.0 }
 0x731   :  { %749 = vadd.xlane.f32.xlu0 %v748_v12 }
 0x747   :  { %805 = vrot.lane.b32.xlu0 %v2066_v17, %s1918_s12 }
 0x7b6   :  { %v747_v7 = vpop.xlane.xlu0 %746 }
 0x7b7   :  { %1876 = vrcp.f32 %v747_v7 }
 0x7ba   :  { %v750_v8 = vpop.xlane.xlu0 %749 }
 0x7bb   :  { %1878 = vrcp.f32 %v750_v8 }
 0x7be   :  { %v806_v9 = vpop.permute.xlu0 %805 }
 0x7bf   :  { %v811_v10 = vsel %vm537_vm11, %v806_v9, 0 }
 0x7c0   :  { %1780 = vmatpush3.bf16.msra.mxu0 %v811_v10 }
 0x7c1   :  { %1793 = vmatprep.subr.bf16.mxu0 %v1911_v11 }
 0x7c4   :  { %v1877_v14 = vpop.eup %1876 }
 0x7c5   :  { %v752_v15 = vmul.f32 %v1877_v14, %v1873_v43  ;;  %v958_v14 = vsub.s32 7, %v2024_v47 }
 0x7c7   :  { %v755_v16 = vpack.c.bf16 %v752_v15, %v752_v15 }
 0x7c8   :  { %v1879_v18 = vpop.eup %1878 }
 0x7c9   :  { %1776 = vmatmul.mubr.msk.bf16.vlgmr.msra.gmra.mxu1 %vm507_vm10, %v755_v16  ;;  %v754_v19 = vmul.f32 %v1879_v18, %v1875_v5  ;;  %v959_v18 = vrot.slane %v2030_v49, %v958_v14 }
 0x7ca   :  { %1789 = vmatprep.mubr.msk.bf16.mxu1 %vm1912_vm4, %v1911_v11  ;;  %1786 = vmatpush3.bf16.msra.mxu1 %v1850_v20 }
 0x7cb   :  { %v756_v17 = vpack.c.bf16 %v754_v19, %v754_v19  ;;  %1787 = vmatprep.subr.bf16.mxu1 %v1911_v11 }
 0x7cd   :  { %1782 = vmatmul.mubr.msk.bf16.vlgmr.msra.gmra.mxu0 %vm507_vm10, %v756_v17  ;;  %v965_v17 = vrot.slane %v2084_v22, %v2059_v6 }
 0x7ce   :  { %1797 = vmatprep.mubr.msk.bf16.mxu0 %vm1912_vm4, %v1911_v11  ;;  %1788 = vmatpush3.bf16.msra.mxu1 %v1851_v21 }
 0x7cf   :  { %1801 = vmatprep.subr.bf16.mxu1 %v1911_v11 }
 0x889   :  { %v799_v23 = vpop.f32.mrf.mxu1 }
 0x88b   :  { %v1777_v24 = vpop.f32.mrf.mxu1 }
 0x88d   :  { %v802_v25 = vpop.f32.mrf.mxu1  ;;  %v847_v26 = vpop.f32.mrf.mxu0 }
 0x88e   :  { %v1843_v27 = vpack.i.bf16 %v847_v26, %v799_v23 }
 0x88f   :  { %v1778_v32 = vpop.f32.mrf.mxu1  ;;  %v1783_v34 = vpop.f32.mrf.mxu0 }
 0x890   :  { %1844 = vrot.lane.b32.xlu1 %v1843_v27, %s1919_s1  ;;  %v1854_v27 = vld [vmem:[%s2314_s3 + $0x28] sm:$0xff]   ;;  %v1855_v32 = vld [vmem:[%s2314_s3 + $0x20] sm:$0xff]   ;;  %v1856_v34 = vld [vmem:[%s2314_s3 + $0x18] sm:$0xff]  }
 0x891   :  { %v850_v38 = vpop.f32.mrf.mxu0 }
 0x892   :  { %v1857_v38 = vld [vmem:[%s2314_s3 + $0x10] sm:$0xff]  }
 0x893   :  { %v1784_v39 = vpop.f32.mrf.mxu0 }
 0x894   :  { %v975_v39 = vsub.s32 2, %v2024_v47 }
 0x902   :  { %v1845_v40 = vpop.permute.xlu1 %1844 }
 0x903   :  { %v1847_v41 = vunpack.i.h.bf16 %v1845_v40  ;;  %v1846_v42 = vunpack.i.l.bf16 %v1845_v40  ;;  %v976_v40 = vrot.slane %v2030_v49, %v975_v39 }
 0x905   :  { %v862_v44 = vsel %vm397_vm9, %v2141_v35, %v1847_v41  ;;  %v861_v45 = vsel %vm397_vm9, %v2139_v29, %v1846_v42 }
 0x906   :  { %v863_v46 = vpack.c.bf16 %v862_v44, %v861_v45 }
 0x908   :  { %1790 = vmatmul.mubr.msk.bf16.vlgmr.msra.gmra.mxu1 %vm287_vm3, %v863_v46 }
 0x909   :  { %1809 = vmatprep.mubr.msk.bf16.mxu1 %vm1912_vm4, %v1911_v11  ;;  %1802 = vmatpush3.bf16.msra.mxu1 %v1854_v27 }
 0x90a   :  { %1803 = vmatprep.subr.bf16.mxu1 %v1911_v11 }
 0x90d   :  { %1804 = vmatpush3.bf16.msra.mxu1 %v1855_v32 }
 0x90e   :  { %1805 = vmatprep.subr.bf16.mxu1 %v1911_v11 }
 0x911   :  { %1806 = vmatpush3.bf16.msra.mxu1 %v1856_v34  ;;  %v1859_v34 = vld [vmem:[%s2314_s3 + $0x30] sm:$0xff]  }
 0x912   :  { %1807 = vmatprep.subr.bf16.mxu1 %v1911_v11 }
 0x915   :  { %1808 = vmatpush3.bf16.msra.mxu1 %v1857_v38 }
 0x916   :  { %1826 = vmatprep.subr.mxu1 %v1911_v11 }
 0x9c8   :  { %v921_v51 = vpop.f32.mrf.mxu1 }
 0x9c9   :  { %v922_v52 = vadd.f32 %v921_v51, %v871_v50 }
 0x9ca   :  { %v1791_v53 = vpop.f32.mrf.mxu1 }
 0x9cb   :  { %v928_v35 = vadd.f32 %v922_v52, %v2035_v59 }
 0x9cc   :  { %v924_v54 = vpop.f32.mrf.mxu1 }
 0x9cd   :  { %v925_v55 = vadd.f32 %v924_v54, %v871_v50  ;;  %v930_v29 = vsel %vm287_vm3, %v928_v35, 0.0 }
 0x9ce   :  { %931 = vadd.xlane.f32.xlu1 %v930_v29  ;;  %v1792_v56 = vpop.f32.mrf.mxu1 }
 0x9cf   :  { %v929_v57 = vadd.f32 %v925_v55, %v2037_v60  ;;  %v1852_v60 = vld [vmem:[%s2315_s4 + $0x8] sm:$0xff]  }
 0x9d0   :  { %1794 = vmatpush3.bf16.msra.mxu0 %v1852_v60 }
 0x9d1   :  { %v933_v58 = vsel %vm287_vm3, %v929_v57, 0.0  ;;  %1795 = vmatprep.subr.bf16.mxu0 %v1911_v11 }
 0x9d2   :  { %934 = vadd.xlane.f32.xlu0 %v933_v58 }
 0x9d4   :  { %1796 = vmatpush3.bf16.msra.mxu0 %v1853_v4 }
 0x9d5   :  { %1813 = vmatprep.subr.bf16.mxu0 %v1911_v11 }
 0xa57   :  { %v932_v61 = vpop.xlane.xlu1 %931 }
 0xa58   :  { %v936_v37 = vmul.f32 0.03125, %v932_v61 }
 0xa5a   :  { %v938_v62 = vsub.f32 %v928_v35, %v936_v37 }
 0xa5b   :  { %v935_v63 = vpop.xlane.xlu0 %934 }
 0xa5c   :  { %v937_v0 = vmul.f32 0.03125, %v935_v63  ;;  %v940_v1 = vmul.f32 %v938_v62, %v938_v62 }
 0xa5e   :  { %v939_v2 = vsub.f32 %v929_v57, %v937_v0  ;;  %v942_v59 = vsel %vm287_vm3, %v940_v1, 0.0 }
 0xa5f   :  { %943 = vadd.xlane.f32.xlu0 %v942_v59 }
 0xa60   :  { %v941_v3 = vmul.f32 %v939_v2, %v939_v2 }
 0xa62   :  { %v945_v43 = vsel %vm287_vm3, %v941_v3, 0.0 }
 0xa63   :  { %946 = vadd.xlane.f32.xlu1 %v945_v43  ;;  %v1062_v43 = vsub.s32 3, %v2024_v47 }
 0xa65   :  { %v1063_v60 = vrot.slane %v2030_v49, %v1062_v43 }
 0xae8   :  { %v944_v5 = vpop.xlane.xlu0 %943 }
 0xae9   :  { %v948_v12 = vmul.f32 0.03125, %v944_v5 }
 0xaeb   :  { %v950_v7 = vadd.f32 1e-12, %v948_v12 }
 0xaec   :  { %v947_v8 = vpop.xlane.xlu1 %946 }
 0xaed   :  { %1880 = vrsqrt.f32 %v950_v7  ;;  %v949_v9 = vmul.f32 0.03125, %v947_v8 }
 0xaef   :  { %v951_v10 = vadd.f32 1e-12, %v949_v9 }
 0xaf1   :  { %1882 = vrsqrt.f32 %v951_v10 }
 0xafa   :  { %v1881_v15 = vpop.eup %1880 }
 0xafb   :  { %v954_v16 = vmul.f32 %v1881_v15, %v938_v62 }
 0xafd   :  { %v960_v21 = vmul.f32 %v959_v18, %v954_v16 }
 0xafe   :  { %v1883_v19 = vpop.eup %1882 }
 0xaff   :  { %v955_v20 = vmul.f32 %v1883_v19, %v939_v2  ;;  %v966_v24 = vadd.f32 %v965_v17, %v960_v21 }
 0xb01   :  { %v961_v23 = vmul.f32 %v959_v18, %v955_v20 }
 0xb03   :  { %v967_v25 = vadd.f32 %v965_v17, %v961_v23 }
 0xb05   :  { %v968_v26 = vpack.c.bf16 %v967_v25, %v966_v24 }
 0xb07   :  { %1798 = vmatmul.mubr.msk.bf16.vlgmr.msra.gmra.mxu0 %vm287_vm3, %v968_v26 }
 0xb08   :  { %1817 = vmatprep.mubr.msk.bf16.mxu0 %vm1912_vm4, %v1911_v11 }
 0xbc7   :  { %v1026_v41 = vpop.f32.mrf.mxu0 }
 0xbc8   :  { %v1027_v42 = vadd.f32 %v1026_v41, %v976_v40 }
 0xbc9   :  { %v1799_v44 = vpop.f32.mrf.mxu0 }
 0xbca   :  { %v1033_v45 = vmul.f32 %v1027_v42, %v1027_v42 }
 0xbcb   :  { %v1029_v46 = vpop.f32.mrf.mxu0 }
 0xbcc   :  { %v1035_v50 = vmul.f32 %v1033_v45, %v1027_v42  ;;  %v1030_v51 = vadd.f32 %v1029_v46, %v976_v40 }
 0xbcd   :  { %v1800_v52 = vpop.f32.mrf.mxu0 }
 0xbce   :  { %v1037_v53 = vmul.f32 0.044715, %v1035_v50  ;;  %v1034_v35 = vmul.f32 %v1030_v51, %v1030_v51  ;;  %v1163_v50 = vrot.slane %v2084_v22, %v2178_v48 }
 0xbd0   :  { %v1039_v54 = vadd.f32 %v1037_v53, %v1027_v42  ;;  %v1036_v55 = vmul.f32 %v1034_v35, %v1030_v51  ;;  %v1169_v53 = vrot.slane %v2084_v22, %v975_v39 }
 0xbd2   :  { %v1041_v29 = vmul.f32 0.7978846, %v1039_v54  ;;  %v1038_v56 = vmul.f32 0.044715, %v1036_v55 }
 0xbd4   :  { %1884 = vtanh.f32 %v1041_v29  ;;  %v1040_v57 = vadd.f32 %v1038_v56, %v1030_v51 }
 0xbd6   :  { %v1042_v58 = vmul.f32 0.7978846, %v1040_v57 }
 0xbd8   :  { %1886 = vtanh.f32 %v1042_v58  ;;  %v1179_v58 = vsub.s32 4, %v2024_v47 }
 0xbe1   :  { %v1885_v61 = vpop.eup %1884 }
 0xbe2   :  { %v1045_v37 = vadd.f32 1.0, %v1885_v61  ;;  %v1180_v61 = vrot.slane %v2030_v49, %v1179_v58 }
 0xbe4   :  { %v1047_v63 = vmul.f32 0.5, %v1045_v37 }
 0xbe5   :  { %v1887_v62 = vpop.eup %1886 }
 0xbe6   :  { %v1046_v0 = vadd.f32 1.0, %v1887_v62  ;;  %v1049_v2 = vmul.f32 %v1047_v63, %v1027_v42 }
 0xbe8   :  { %v1048_v1 = vmul.f32 0.5, %v1046_v0 }
 0xbea   :  { %v1050_v59 = vmul.f32 %v1048_v1, %v1030_v51 }
 0xbec   :  { %v1051_v3 = vpack.c.bf16 %v1050_v59, %v1049_v2  ;;  %v1242_v2 = vrot.slane %v2084_v22, %v1062_v43 }
 0xbee   :  { %1810 = vmatmul.mubr.msk.bf16.vlgmr.msra.gmra.mxu1 %vm51_vm0, %v1051_v3  ;;  %vm1494_vm0 = vcmask 1041409  }
 0xbef   :  { %1828 = vmatprep.mubr.msk.f32.mxu1 %vm1912_vm4, %v1911_v11 }
 0xcae   :  { %v1125_v4 = vpop.f32.mrf.mxu1 }
 0xcaf   :  { %v1126_v5 = vadd.f32 %v1125_v4, %v1063_v60 }
 0xcb0   :  { %v1811_v12 = vpop.f32.mrf.mxu1 }
 0xcb1   :  { %v1132_v7 = vadd.f32 %v1126_v5, %v966_v24  ;;  %v2259_v5 = vsub.s32 %v1987_v13, %v2024_v47 }
 0xcb2   :  { %v1128_v8 = vpop.f32.mrf.mxu1 }
 0xcb3   :  { %v1129_v9 = vadd.f32 %v1128_v8, %v1063_v60  ;;  %v1134_v10 = vsel %vm287_vm3, %v1132_v7, 0.0 }
 0xcb4   :  { %1135 = vadd.xlane.f32.xlu0 %v1134_v10  ;;  %v1812_v14 = vpop.f32.mrf.mxu1 }
 0xcb5   :  { %v1133_v15 = vadd.f32 %v1129_v9, %v967_v25  ;;  %v1858_v25 = vld [vmem:[%s2314_s3 + $0x38] sm:$0xff]  }
 0xcb6   :  { %1814 = vmatpush3.bf16.msra.mxu0 %v1858_v25 }
 0xcb7   :  { %v1137_v16 = vsel %vm287_vm3, %v1133_v15, 0.0  ;;  %1815 = vmatprep.subr.bf16.mxu0 %v1911_v11 }
 0xcb8   :  { %1138 = vadd.xlane.f32.xlu1 %v1137_v16 }
 0xcba   :  { %1816 = vmatpush3.bf16.msra.mxu0 %v1859_v34 }
 0xcbb   :  { %1821 = vmatprep.subr.mxu0 %v1911_v11 }
 0xd3d   :  { %v1136_v18 = vpop.xlane.xlu0 %1135 }
 0xd3e   :  { %v1140_v19 = vmul.f32 0.03125, %v1136_v18 }
 0xd40   :  { %v1142_v17 = vsub.f32 %v1132_v7, %v1140_v19 }
 0xd41   :  { %v1139_v20 = vpop.xlane.xlu1 %1138 }
 0xd42   :  { %v1141_v21 = vmul.f32 0.03125, %v1139_v20  ;;  %v1144_v23 = vmul.f32 %v1142_v17, %v1142_v17 }
 0xd44   :  { %v1143_v26 = vsub.f32 %v1133_v15, %v1141_v21  ;;  %v1146_v27 = vsel %vm287_vm3, %v1144_v23, 0.0 }
 0xd45   :  { %1147 = vadd.xlane.f32.xlu0 %v1146_v27 }
 0xd46   :  { %v1145_v24 = vmul.f32 %v1143_v26, %v1143_v26 }
 0xd48   :  { %v1149_v32 = vsel %vm287_vm3, %v1145_v24, 0.0 }
 0xd49   :  { %1150 = vadd.xlane.f32.xlu1 %v1149_v32 }
 0xdce   :  { %v1148_v38 = vpop.xlane.xlu0 %1147 }
 0xdcf   :  { %v1152_v40 = vmul.f32 0.03125, %v1148_v38 }
 0xdd1   :  { %v1154_v41 = vadd.f32 1e-12, %v1152_v40 }
 0xdd2   :  { %v1151_v42 = vpop.xlane.xlu1 %1150 }
 0xdd3   :  { %1888 = vrsqrt.f32 %v1154_v41  ;;  %v1153_v44 = vmul.f32 0.03125, %v1151_v42 }
 0xdd5   :  { %v1155_v45 = vadd.f32 1e-12, %v1153_v44 }
 0xdd7   :  { %1890 = vrsqrt.f32 %v1155_v45 }
 0xde0   :  { %v1889_v46 = vpop.eup %1888 }
 0xde1   :  { %v1158_v51 = vmul.f32 %v1889_v46, %v1142_v17 }
 0xde3   :  { %v1164_v54 = vmul.f32 %v1163_v50, %v1158_v51 }
 0xde4   :  { %v1891_v52 = vpop.eup %1890 }
 0xde5   :  { %v1159_v35 = vmul.f32 %v1891_v52, %v1143_v26  ;;  %v1170_v29 = vadd.f32 %v1169_v53, %v1164_v54 }
 0xde7   :  { %v1165_v55 = vmul.f32 %v1163_v50, %v1159_v35 }
 0xde9   :  { %v1171_v56 = vadd.f32 %v1169_v53, %v1165_v55 }
 0xdeb   :  { %v1172_v57 = vpack.c.bf16 %v1171_v56, %v1170_v29 }
 0xded   :  { %1818 = vmatmul.mubr.msk.bf16.vlgmr.msra.gmra.mxu0 %vm287_vm3, %v1172_v57 }
 0xdee   :  { %1823 = vmatprep.mubr.msk.f32.mxu0 %vm1912_vm4, %v1911_v11  ;;  %vm1582_vm4 = vcmask 203776  }
 0xead   :  { %v1230_v37 = vpop.f32.mrf.mxu0 }
 0xeae   :  { %v1231_v62 = vadd.f32 %v1230_v37, %v1180_v61 }
 0xeaf   :  { %v1819_v63 = vpop.f32.mrf.mxu0 }
 0xeb0   :  { %1892 = vtanh.f32 %v1231_v62 }
 0xeb1   :  { %v1233_v39 = vpop.f32.mrf.mxu0 }
 0xeb2   :  { %v1234_v0 = vadd.f32 %v1233_v39, %v1180_v61 }
 0xeb3   :  { %v1820_v1 = vpop.f32.mrf.mxu0 }
 0xeb4   :  { %1894 = vtanh.f32 %v1234_v0 }
 0xebd   :  { %v1893_v59 = vpop.eup %1892 }
 0xebe   :  { %1822 = vmatpush3.msra.mxu0 %v1893_v59  ;;  %v1243_v3 = vmul.f32 %v1893_v59, %v1242_v2 }
 0xec0   :  { %v1245_v11 = vsel %vm287_vm3, %v1243_v3, 0.0 }
 0xec1   :  { %v1895_v60 = vpop.eup %1894  ;;  %1246 = vadd.xlane.f32.xlu0 %v1245_v11 }
 0xec2   :  { %1827 = vmatpush3.msra.mxu1 %v1895_v60  ;;  %v1244_v49 = vmul.f32 %v1895_v60, %v1242_v2 }
 0xec4   :  { %v1248_v4 = vsel %vm287_vm3, %v1244_v49, 0.0 }
 0xec5   :  { %1249 = vadd.xlane.f32.xlu1 %v1248_v4 }
 0xf4a   :  { %v1247_v12 = vpop.xlane.xlu0 %1246 }
 0xf4b   :  { %v1257_v43 = vrot.slane %v1247_v12, %v2259_v5 }
 0xf4e   :  { %v1250_v7 = vpop.xlane.xlu1 %1249 }
 0xf4f   :  { %v1261_v8 = vrot.slane %v1250_v7, %v2259_v5 }
 0xf51   :  { %v1263_v9 = vsel %vm1262_vm12, %v1261_v8, %v1257_v43 }
 0xf52   :  { %v1265_v10 = vsel %vm1251_vm13, %v1263_v9, -1e+30 }
 0xf53   :  { %v1267_v14 = vsel %vm1266_vm14, %v1265_v10, -inf }
 0xf54   :  { %1268 = vmax.xlane.f32.xlu0 %v1267_v14 }
 0xfdd   :  { %v1269_v15 = vpop.xlane.xlu0 %1268 }
 0xfde   :  { %v1270_v16 = vsub.f32 %v1265_v10, %v1269_v15 }
 0xfe0   :  { %v1271_v18 = vmul.f32 1.442695, %v1270_v16 }
 0xfe2   :  { %1896 = vpow2.f32 %v1271_v18 }
 0xfef   :  { %v1897_v19 = vpop.eup %1896 }
 0xff0   :  { %v1273_v17 = vsel %vm1266_vm14, %v1897_v19, 0.0 }
 0xff1   :  { %1274 = vadd.xlane.f32.xlu1 %v1273_v17 }
0x107a   :  { %v1275_v20 = vpop.xlane.xlu1 %1274 }
0x107b   :  { %1898 = vrcp.f32 %v1275_v20 }
0x1088   :  { %v1899_v21 = vpop.eup %1898 }
0x1089   :  { %v2264_v23 = vmul.f32 %v1899_v21, %v1897_v19 }
0x108b   :  { %v1279_v22 = vcombine.high %v2264_v23, %v2264_v23 }
0x108d   :  { %v1286_v26 = vrot.slane %v1279_v22, %v2090_v30 }
0x108f   :  { %v1294_v27 = vrot.slane %v1286_v26, %v2090_v30  ;;  %v1287_v24 = vcombine.high %v1286_v26, %v1286_v26 }
0x1091   :  { %1824 = vmatmul.mubr.msk.f32.vlgmr.msra.gmra.mxu0 %vm507_vm10, %v1294_v27  ;;  %v1301_v32 = vrot.slane %v1287_v24, %v2090_v30 }
0x1093   :  { %1829 = vmatmul.mubr.msk.f32.vlgmr.msra.gmra.mxu1 %vm507_vm10, %v1301_v32 }
0x1151   :  { %v1370_v25 = vpop.f32.mrf.mxu0 }
0x1152   :  { %v1449_v34 = vrot.slane %v1370_v25, %v2059_v6 }
0x1153   :  { %v1825_v38 = vpop.f32.mrf.mxu0  ;;  %v1442_v40 = vpop.f32.mrf.mxu1 }
0x1154   :  { %v1453_v41 = vrot.slane %v1442_v40, %v2059_v6  ;;  %v1455_v42 = vmul.f32 %v2087_v28, %v1449_v34  ;;  %v1454_v44 = vmul.f32 %v1449_v34, %v2092_v31  ;;  %v1478_v28 = vadd.s32 4294967288, %v1987_v13 }
0x1155   :  { %v1830_v45 = vpop.f32.mrf.mxu1 }
0x1156   :  { %v1461_v46 = vsel %vm287_vm3, %v1455_v42, 0.0  ;;  %v1458_v50 = vsel %vm287_vm3, %v1454_v44, 0.0  ;;  %v1457_v30 = vmul.f32 %v2095_v33, %v1453_v41  ;;  %v1456_v51 = vmul.f32 %v1453_v41, %v2098_v36 }
0x1157   :  { %1462 = vadd.xlane.f32.xlu1 %v1461_v46  ;;  %1459 = vadd.xlane.f32.xlu0 %v1458_v50  ;;  %v1481_v31 = vsub.s32 %v1478_v28, %v2024_v47 }
0x1158   :  { %v1467_v52 = vsel %vm287_vm3, %v1457_v30, 0.0  ;;  %v1464_v53 = vsel %vm287_vm3, %v1456_v51, 0.0  ;;  %vm1580_vm3 = vcmask 195584  }
0x115b   :  { %1468 = vadd.xlane.f32.xlu1 %v1467_v52  ;;  %1465 = vadd.xlane.f32.xlu0 %v1464_v53 }
0x11e0   :  { %v1463_v35 = vpop.xlane.xlu1 %1462  ;;  %v1460_v54 = vpop.xlane.xlu0 %1459 }
0x11e1   :  { %v1482_v55 = vrot.slane %v1463_v35, %v1481_v31  ;;  %v1477_v29 = vrot.slane %v1460_v54, %v2259_v5 }
0x11e3   :  { %v1484_v58 = vsel %vm1483_vm15, %v1482_v55, %v1477_v29 }
0x11e4   :  { %v1469_v33 = vpop.xlane.xlu1 %1468  ;;  %v1466_v56 = vpop.xlane.xlu0 %1465 }
0x11e5   :  { %v1492_v36 = vrot.slane %v1469_v33, %v1481_v31  ;;  %v1488_v57 = vrot.slane %v1466_v56, %v2259_v5 }
0x11e7   :  { %v1493_v61 = vsel %vm1483_vm15, %v1492_v36, %v1488_v57 }
0x11e8   :  { %v1495_v37 = vsel %vm1494_vm0, %v1493_v61, %v1484_v58 }
0x11e9   :  { %v1498_v47 = vsel %vm1497_vm1, %v1495_v37, -inf }
0x11ea   :  { %1499 = vmax.xlane.f32.xlu0 %v1498_v47 }
0x1273   :  { %v1500_v62 = vpop.xlane.xlu0 %1499 }
0x1274   :  { %v1505_v63 = vrot.slane %v1500_v62, %v2059_v6  ;;  %v1509_v39 = vrot.slane %v1500_v62, %v2178_v48  ;;  %v260_v6 = vld [vmem:[%s2310_s0 + $0x30] sm:$0x3] }
0x1276   :  { %v1512_v0 = vsub.f32 %v1460_v54, %v1505_v63  ;;  %v1513_v1 = vsub.f32 %v1463_v35, %v1505_v63  ;;  %v1514_v2 = vsub.f32 %v1466_v56, %v1509_v39  ;;  %v1515_v11 = vsub.f32 %v1469_v33, %v1509_v39 }
0x1278   :  { %v1516_v59 = vmul.f32 1.442695, %v1512_v0  ;;  %v1518_v3 = vmul.f32 1.442695, %v1513_v1  ;;  %v1520_v60 = vmul.f32 1.442695, %v1514_v2 }
0x1279   :  { %v1522_v49 = vmul.f32 1.442695, %v1515_v11 }
0x127a   :  { %1900 = vpow2.f32 %v1516_v59 }
0x127b   :  { %1902 = vpow2.f32 %v1518_v3 }
0x127c   :  { %1904 = vpow2.f32 %v1520_v60 }
0x127d   :  { %1906 = vpow2.f32 %v1522_v49 }
0x1287   :  { %v1901_v4 = vpop.eup %1900 }
0x1288   :  { %v1903_v12 = vpop.eup %1902  ;;  %1529 = vperm.xlu1 %1842, %v1901_v4  }
0x1289   :  { %1532 = vperm.xlu0 %1841, %v1903_v12   ;;  %v1905_v48 = vpop.eup %1904 }
0x128a   :  { %v1907_v7 = vpop.eup %1906 }
0x128c   :  { %1535 = vperm.xlu1 %1842, %v1905_v48  }
0x128d   :  { %1567 = vperm.xlu0 %1841, %v260_v6  }
0x1290   :  { %1538 = vperm.xlu1 %1842, %v1907_v7  }
0x1303   :  { %v1530_v43 = vpop.permute.xlu1 %1529 }
0x1304   :  { %v1533_v8 = vpop.permute.xlu0 %1532  ;;  %v1543_v15 = vrot.slane %v1530_v43, %v2259_v5 }
0x1305   :  { %v1547_v14 = vrot.slane %v1533_v8, %v1481_v31 }
0x1307   :  { %v1536_v9 = vpop.permute.xlu1 %1535  ;;  %v1548_v21 = vsel %vm1483_vm15, %v1547_v14, %v1543_v15 }
0x1308   :  { %v1568_v10 = vpop.permute.xlu0 %1567  ;;  %v1552_v17 = vrot.slane %v1536_v9, %v2259_v5 }
0x1309   :  { %vm1569_vm2 = vcmp.eq.s32.totalorder %v1987_v13, %v1568_v10  ;;  %v1575_v13 = vrot.slane %v2264_v23, 4 }
0x130a   :  { %v1570_v16 = vsel %vm1569_vm2, %v1495_v37, 0.0 }
0x130b   :  { %v1571_v18 = vsel %vm1497_vm1, %v1570_v16, 0.0  ;;  %v1539_v19 = vpop.permute.xlu1 %1538 }
0x130c   :  { %1572 = vadd.xlane.f32.xlu0 %v1571_v18  ;;  %v1556_v20 = vrot.slane %v1539_v19, %v1481_v31 }
0x130e   :  { %v1557_v22 = vsel %vm1483_vm15, %v1556_v20, %v1552_v17 }
0x130f   :  { %v1558_v26 = vsel %vm1494_vm0, %v1557_v22, %v1548_v21 }
0x1310   :  { %v1560_v27 = vsel %vm1497_vm1, %v1558_v26, 0.0 }
0x1311   :  { %1561 = vadd.xlane.f32.xlu1 %v1560_v27 }
0x1322   :  { %1576 = vrot.lane.b32.xlu0 %v1575_v13, %s1919_s1 }
0x1395   :  { %v1573_v32 = vpop.xlane.xlu0 %1572 }
0x1399   :  { %v1577_v34 = vpop.permute.xlu0 %1576 }
0x139a   :  { %v1562_v24 = vpop.xlane.xlu1 %1561  ;;  %v1579_v41 = vsel %vm397_vm9, %v1495_v37, %v1577_v34 }
0x139b   :  { %1908 = vlog2.f32 %v1562_v24 }
0x13a8   :  { %v1909_v25 = vpop.eup %1908 }
0x13a9   :  { %v1564_v5 = vmul.f32 0.6931472, %v1909_v25 }
0x13ab   :  { %v1565_v38 = vadd.f32 %v1564_v5, %v1500_v62 }
0x13ad   :  { %v1574_v40 = vsub.f32 %v1565_v38, %v1573_v32 }
0x13af   :  { %v1581_v42 = vsel %vm1580_vm3, %v1579_v41, %v1574_v40 }
0x13b0   :  { %v1583_v44 = vsel %vm1582_vm4, %v1581_v42, 0.0 }
0x13b1   :  { %1584 = vst [vmem:[%s2316_s6] sm:$0x3] %v1583_v44 }

</bundles_post_ra>
